<compile_context>
chip_gen: v7x
topology: tpu7x:2x2x1
jax: 0.10.0
libtpu: 0.0.40
codegen_flags: <defaults>
</compile_context>

<pallas_src>
import functools
import math

import jax
import jax.numpy as jnp
import numpy as np
from jax import lax
from jax.experimental import pallas as pl
from jax.experimental.pallas import tpu as pltpu


# ----------------------------------------------------------------------------
# Relative position index (same construction as Swin's get_relative_position_index)
# ----------------------------------------------------------------------------
def get_relative_position_index(win_h, win_w):
    coords = np.stack(np.meshgrid(np.arange(win_h), np.arange(win_w), indexing="ij"))
    coords_flatten = coords.reshape(2, -1)                                   # (2, N)
    rel = coords_flatten[:, :, None] - coords_flatten[:, None, :]            # (2, N, N)
    rel = rel.transpose(1, 2, 0).astype(np.int64)                            # (N, N, 2)
    rel[:, :, 0] += win_h - 1
    rel[:, :, 1] += win_w - 1
    rel[:, :, 0] *= 2 * win_w - 1
    return rel.sum(-1)                                                       # (N, N)


def _round_up(x, m):
    return (x + m - 1) // m * m


def _tensorcores_per_device():
    """1 for v5e/v6e (single TensorCore per device); 2 for v7x / megacore."""
    try:
        kind = jax.devices()[0].device_kind.lower()
    except Exception:
        return 2
    if "lite" in kind or "v5e" in kind or "v6" in kind:
        return 1
    return 2


def _pick_tb(b_, n, num_win, num_cores):
    """Windows per grid step.

    tb must (a) divide B_, (b) be a multiple of num_win so the window ->
    bias-table row mapping inside a step is static, and (c) give ~256-512
    rows per step to fill the MXU M dimension.  Keep >= 2 grid steps only on
    2-TensorCore parts (v7x/megacore, dimension_semantics="parallel"); on
    1-TC parts a single larger step is strictly better (halving TB just
    doubles per-step pipeline overhead with zero parallelism benefit).
    """
    batch = b_ // num_win
    cands = [num_win * d for d in range(1, batch + 1) if batch % d == 0]
    target_rows = 256 if num_cores >= 2 else 512
    tb = cands[0]
    for c in cands:
        if c * n <= target_rows:
            tb = max(tb, c)
    if num_cores >= 2 and b_ // tb < 2:
        smaller = [c for c in cands if b_ // c >= 2]
        if smaller:
            tb = max(smaller)
    return tb


# ----------------------------------------------------------------------------
# Pallas kernel: one grid step == TB windows (TB rows of B_)
# ----------------------------------------------------------------------------
def _window_attn_kernel(x_ref, wqkv_ref, bqkv_ref, bm_ref, wproj_ref, bproj_ref,
                        o_ref, *, tb, n, num_heads, head_dim, attn_dim, num_win):
    rows = tb * n
    hb = num_heads * tb

    # Fused QKV projection: one MXU matmul with M = TB*N rows, bf16 in / f32 acc.
    # Column layout of the 3*H*Dh axis is [3, H, Dh] (matches torch
    # reshape(B_, N, 3, H, Dh)).  1/sqrt(Dh) is already folded into the Q
    # columns of W_qkv / b_qkv.
    x = x_ref[...]                                                           # (rows, Cp) bf16
    qkv = jnp.dot(x, wqkv_ref[...], preferred_element_type=jnp.float32)
    qkv = qkv + bqkv_ref[0]                                                  # (rows, 3*H*Dh) f32
    qkvb = qkv.astype(jnp.bfloat16)                                          # bf16 MXU operands

    def heads(base):
        # Per-head lane slice -> (tb, n, Dh) via a leading-dim split, stacked
        # on a new leading batch axis ordered (head, window): (H*tb, n, Dh).
        # Only static lane slices + leading-dim reshapes/concats; no transpose
        # of the tiled (sublane, lane) dims inside the kernel.
        parts = [
            qkvb[:, base + h * head_dim: base + (h + 1) * head_dim]
            .reshape(tb, n, head_dim)
            for h in range(num_heads)
        ]
        return jnp.concatenate(parts, axis=0)

    qh = heads(0)                                                            # (H*tb, n, Dh) bf16
    kh = heads(attn_dim)
    vh = heads(2 * attn_dim)

    # scores[j, i, k] = sum_d qh[j, i, d] * kh[j, k, d]  (batched over H*tb;
    # K-transpose folded into the contraction -> no materialized k.T).
    s = lax.dot_general(qh, kh, (((2,), (2,)), ((0,), (0,))),
                        preferred_element_type=jnp.float32)                  # (H*tb, n, n) f32

    # Fused rel-pos bias + shifted-window mask from the resident table
    # (H, num_win, n, n).  tb % num_win == 0 guarantees the local window index
    # is (local batch index) % num_win, so the mapping is a static reshape.
    rep = tb // num_win
    s = (s.reshape(num_heads, rep, num_win, n, n) + bm_ref[...][:, None]
         ).reshape(hb, n, n)

    # softmax over the key axis, f32; normalization via EUP reciprocal.
    s = s - jnp.max(s, axis=-1, keepdims=True)
    p = jnp.exp(s)
    p = p * pl.reciprocal(jnp.sum(p, axis=-1, keepdims=True), approx=True)
    p = p.astype(jnp.bfloat16)                                               # bf16 P@V operand

    # out[j, i, d] = sum_k p[j, i, k] * vh[j, k, d]
    oh = lax.dot_general(p, vh, (((2,), (1,)), ((0,), (0,))),
                         preferred_element_type=jnp.float32)                 # (H*tb, n, Dh) f32
    ohb = oh.astype(jnp.bfloat16)

    # Heads back to lanes -> (rows, attn_dim), then ONE projection matmul with
    # K = attn_dim (not H accumulated K = head_dim matmuls).
    oc = jnp.concatenate(
        [ohb[h * tb:(h + 1) * tb].reshape(rows, head_dim)
         for h in range(num_heads)], axis=-1)                                # (rows, attn_dim) bf16

    out = jnp.dot(oc, wproj_ref[...], preferred_element_type=jnp.float32)
    out = out + bproj_ref[0]                                                 # (rows, ODp) f32
    # ODp is padded to 128 lanes -> unmasked, lane-dense stores.
    o_ref[...] = out.astype(o_ref.dtype)


# ----------------------------------------------------------------------------
# Wrapper
# ----------------------------------------------------------------------------
def window_attention_pallas(x, w_qkv, b_qkv, rel_bias, mask, w_proj, b_proj,
                            *, num_heads, head_dim):
    """x: (B_, N, C); mask: (num_win, N, N) or None; rel_bias: (num_heads, N, N)."""
    B_, N, C = x.shape
    attn_dim = num_heads * head_dim
    out_dim = w_proj.shape[1]
    scale = 1.0 / math.sqrt(head_dim)

    if mask is None:
        mask = jnp.zeros((1, N, N), jnp.float32)
    num_win = mask.shape[0]
    assert B_ % num_win == 0, "B_ must be batch * num_windows"

    num_cores = _tensorcores_per_device()
    tb = _pick_tb(B_, N, num_win, num_cores)
    grid = (B_ // tb,)

    # ---- one-time parameter prep (would live in module init in a real setup) ----
    # Fold 1/sqrt(head_dim) into the Q columns of W_qkv / b_qkv.
    w_qkv = w_qkv.astype(jnp.float32).at[:, :attn_dim].multiply(scale)
    b_qkv = b_qkv.astype(jnp.float32).at[:attn_dim].multiply(scale)

    # Pad channel dims to the 128-lane width so the streamed x block and the
    # output slab are lane-dense (zero rows/cols keep the math identical).
    Cp = _round_up(C, 128)
    ODp = _round_up(out_dim, 128)

    x2 = jnp.pad(x.astype(jnp.float32), ((0, 0), (0, 0), (0, Cp - C)))
    x2 = x2.reshape(B_ * N, Cp).astype(jnp.bfloat16)                         # (B_*N, Cp) bf16
    w_qkv_p = jnp.pad(w_qkv, ((0, Cp - C), (0, 0))).astype(jnp.bfloat16)     # (Cp, 3*attn_dim)
    b_qkv_p = b_qkv.reshape(1, -1)                                           # (1, 3*attn_dim) f32
    w_proj_p = jnp.pad(w_proj.astype(jnp.float32),
                       ((0, 0), (0, ODp - out_dim))).astype(jnp.bfloat16)    # (attn_dim, ODp)
    b_proj_p = jnp.pad(b_proj.astype(jnp.float32),
                       (0, ODp - out_dim)).reshape(1, -1)                    # (1, ODp) f32

    # Fused (rel-pos bias + window mask) table, heads-major, VMEM-resident.
    bm = (rel_bias.astype(jnp.float32)[:, None, :, :]
          + mask.astype(jnp.float32)[None, :, :, :])                         # (H, num_win, N, N)

    kernel = functools.partial(
        _window_attn_kernel,
        tb=tb, n=N, num_heads=num_heads, head_dim=head_dim,
        attn_dim=attn_dim, num_win=num_win)

    out = pl.pallas_call(
        kernel,
        out_shape=jax.ShapeDtypeStruct((B_ * N, ODp), jnp.float32),
        grid=grid,
        in_specs=[
            pl.BlockSpec((tb * N, Cp), lambda g: (g, 0)),                    # x (streams, lane-dense)
            pl.BlockSpec((Cp, 3 * attn_dim), lambda g: (0, 0)),              # W_qkv (resident)
            pl.BlockSpec((1, 3 * attn_dim), lambda g: (0, 0)),               # b_qkv (resident)
            pl.BlockSpec((num_heads, num_win, N, N),
                         lambda g: (0, 0, 0, 0)),                            # bias+mask (resident)
            pl.BlockSpec((attn_dim, ODp), lambda g: (0, 0)),                 # W_proj (resident)
            pl.BlockSpec((1, ODp), lambda g: (0, 0)),                        # b_proj (resident)
        ],
        out_specs=pl.BlockSpec((tb * N, ODp), lambda g: (g, 0)),             # lane-dense slab
        compiler_params=pltpu.CompilerParams(
            dimension_semantics=("parallel",),
            # Everything here is KiB-scale; 32 MiB stays within every chip's
            # scoped default / physical VMEM (incl. v7x's 64 MiB).  At real
            # Swin sizes re-derive tb against this budget.
            vmem_limit_bytes=32 * 1024 * 1024),
    )(x2, w_qkv_p, b_qkv_p, bm, w_proj_p, b_proj_p)

    # Wrapper-side slice/reshape is layout plumbing, not compute.
    return out[:, :out_dim].reshape(B_, N, out_dim)


# ----------------------------------------------------------------------------
# Pure-JAX reference (mirrors the PyTorch forward, f32 throughout)
# ----------------------------------------------------------------------------
def window_attention_ref(x, w_qkv, b_qkv, rel_bias, mask, w_proj, b_proj,
                         *, num_heads, head_dim):
    B_, N, C = x.shape
    scale = 1.0 / math.sqrt(head_dim)
    qkv = x @ w_qkv + b_qkv                                                  # (B_, N, 3*H*Dh)
    qkv = qkv.reshape(B_, N, 3, num_heads, head_dim).transpose(2, 0, 3, 1, 4)
    q, k, v = qkv[0], qkv[1], qkv[2]                                         # (B_, H, N, Dh)
    q = q * scale
    attn = jnp.einsum("bhnd,bhmd->bhnm", q, k)
    attn = attn + rel_bias[None]
    num_win = mask.shape[0]
    attn = attn.reshape(B_ // num_win, num_win, num_heads, N, N) + mask[None, :, None]
    attn = attn.reshape(B_, num_heads, N, N)
    attn = jax.nn.softmax(attn, axis=-1)
    out = jnp.einsum("bhnm,bhmd->bhnd", attn, v)
    out = out.transpose(0, 2, 1, 3).reshape(B_, N, num_heads * head_dim)
    return out @ w_proj + b_proj


# ----------------------------------------------------------------------------
# Main
# ----------------------------------------------------------------------------
if __name__ == "__main__":
    # Module config (small, consistent with WindowAttention semantics).
    dim = 32
    num_heads = 4
    head_dim = dim // num_heads          # default head_dim
    attn_dim = num_heads * head_dim
    win_h = win_w = 4                    # window_size = 4
    N = win_h * win_w                    # window_area = 16
    batch = 2
    num_windows = 4
    B_ = batch * num_windows             # 8

    key = jax.random.PRNGKey(0)
    k_x, k_tbl, k_wqkv, k_bqkv, k_wproj, k_bproj, k_mask = jax.random.split(key, 7)

    x = jax.random.normal(k_x, (B_, N, dim), dtype=jnp.float32)

    # Parameters (deterministic synthetic init).
    rel_table = 0.02 * jax.random.normal(
        k_tbl, ((2 * win_h - 1) * (2 * win_w - 1), num_heads), dtype=jnp.float32)
    w_qkv = 0.05 * jax.random.normal(k_wqkv, (dim, 3 * attn_dim), dtype=jnp.float32)
    b_qkv = 0.05 * jax.random.normal(k_bqkv, (3 * attn_dim,), dtype=jnp.float32)
    w_proj = 0.05 * jax.random.normal(k_wproj, (attn_dim, dim), dtype=jnp.float32)
    b_proj = 0.05 * jax.random.normal(k_bproj, (dim,), dtype=jnp.float32)

    # Relative position bias: (num_heads, N, N), heads-first (intended semantics).
    rel_index = jnp.asarray(get_relative_position_index(win_h, win_w))       # (N, N)
    rel_bias = rel_table[rel_index.reshape(-1)].reshape(N, N, num_heads)
    rel_bias = jnp.transpose(rel_bias, (2, 0, 1))                            # (H, N, N)

    # (0 / -100) shifted-window style mask, one per window.
    mask = jnp.where(jax.random.uniform(k_mask, (num_windows, N, N)) > 0.75,
                     -100.0, 0.0).astype(jnp.float32)

    out = window_attention_pallas(x, w_qkv, b_qkv, rel_bias, mask, w_proj, b_proj,
                                  num_heads=num_heads, head_dim=head_dim)
    out = jax.block_until_ready(out)

    ref = window_attention_ref(x, w_qkv, b_qkv, rel_bias, mask, w_proj, b_proj,
                               num_heads=num_heads, head_dim=head_dim)
    ref = jax.block_until_ready(ref)

    assert out.shape == (B_, N, dim), out.shape
    # Tolerance accounts for bf16 MXU operands (all four matmuls) + approx EUP
    # reciprocal in the kernel vs. the pure-f32 reference.
    np.testing.assert_allclose(np.asarray(out), np.asarray(ref), rtol=2e-2, atol=2e-2)

    print("KERNEL_OK")
</pallas_src>

<mosaic_0001>
module attributes {stable_mosaic.version = 11 : i64} {
  func.func @_window_attn_kernel(%arg0: i32, %arg1: memref<64x128xbf16, #tpu.memory_space<vmem>>, %arg2: memref<128x96xbf16, #tpu.memory_space<vmem>>, %arg3: memref<1x96xf32, #tpu.memory_space<vmem>>, %arg4: memref<4x4x16x16xf32, #tpu.memory_space<vmem>>, %arg5: memref<32x128xbf16, #tpu.memory_space<vmem>>, %arg6: memref<1x128xf32, #tpu.memory_space<vmem>>, %arg7: memref<64x128xf32, #tpu.memory_space<vmem>>) attributes {dimension_semantics = [#tpu.dimension_semantics<parallel>], iteration_bounds = array<i64: 2>, scalar_prefetch = 0 : i64, scratch_operands = 0 : i64, tpu.core_type = #tpu.core_type<tc>, window_params = [{transform_indices = @transform_0, window_bounds = array<i64: 64, 128>}, {pipeline_mode = #tpu.pipeline_mode<synchronous>, transform_indices = @transform_1, window_bounds = array<i64: 128, 96>}, {pipeline_mode = #tpu.pipeline_mode<synchronous>, transform_indices = @transform_2, window_bounds = array<i64: 1, 96>}, {pipeline_mode = #tpu.pipeline_mode<synchronous>, transform_indices = @transform_3, window_bounds = array<i64: 4, 4, 16, 16>}, {pipeline_mode = #tpu.pipeline_mode<synchronous>, transform_indices = @transform_4, window_bounds = array<i64: 32, 128>}, {pipeline_mode = #tpu.pipeline_mode<synchronous>, transform_indices = @transform_5, window_bounds = array<i64: 1, 128>}, {transform_indices = @transform_6, window_bounds = array<i64: 64, 128>}]} {
    %c0 = arith.constant 0 : index
    %c0_0 = arith.constant 0 : index
    %0 = vector.load %arg1[%c0, %c0_0] : memref<64x128xbf16, #tpu.memory_space<vmem>>, vector<64x128xbf16>
    %c0_1 = arith.constant 0 : index
    %c0_2 = arith.constant 0 : index
    %1 = vector.load %arg2[%c0_1, %c0_2] : memref<128x96xbf16, #tpu.memory_space<vmem>>, vector<128x96xbf16>
    %cst = arith.constant dense<0.000000e+00> : vector<64x96xf32>
    %2 = tpu.matmul %0, %1, %cst {dimension_numbers = #tpu.dot_dimension_numbers<[1], [0], [0], [1], [0, 0, 1, 1], [], []>} : vector<64x128xbf16>, vector<128x96xbf16>, vector<64x96xf32> -> vector<64x96xf32>
    %c0_3 = arith.constant 0 : index
    %c0_4 = arith.constant 0 : index
    %3 = vector.load %arg3[%c0_3, %c0_4] : memref<1x96xf32, #tpu.memory_space<vmem>>, vector<1x96xf32>
    %4 = vector.shape_cast %3 : vector<1x96xf32> to vector<96xf32>
    %5 = vector.shape_cast %4 : vector<96xf32> to vector<1x96xf32>
    %6 = vector.broadcast %5 : vector<1x96xf32> to vector<64x96xf32>
    %7 = arith.addf %2, %6 : vector<64x96xf32>
    %8 = arith.truncf %7 : vector<64x96xf32> to vector<64x96xbf16>
    %9 = vector.extract_strided_slice %8 {offsets = [0, 0], sizes = [64, 8], strides = [1, 1]} : vector<64x96xbf16> to vector<64x8xbf16>
    %10 = vector.shape_cast %9 : vector<64x8xbf16> to vector<4x16x8xbf16>
    %11 = vector.extract_strided_slice %8 {offsets = [0, 8], sizes = [64, 8], strides = [1, 1]} : vector<64x96xbf16> to vector<64x8xbf16>
    %12 = vector.shape_cast %11 : vector<64x8xbf16> to vector<4x16x8xbf16>
    %13 = vector.extract_strided_slice %8 {offsets = [0, 16], sizes = [64, 8], strides = [1, 1]} : vector<64x96xbf16> to vector<64x8xbf16>
    %14 = vector.shape_cast %13 : vector<64x8xbf16> to vector<4x16x8xbf16>
    %15 = vector.extract_strided_slice %8 {offsets = [0, 24], sizes = [64, 8], strides = [1, 1]} : vector<64x96xbf16> to vector<64x8xbf16>
    %16 = vector.shape_cast %15 : vector<64x8xbf16> to vector<4x16x8xbf16>
    %17 = tpu.concatenate %10, %12, %14, %16 in 0 : vector<4x16x8xbf16>, vector<4x16x8xbf16>, vector<4x16x8xbf16>, vector<4x16x8xbf16> -> vector<16x16x8xbf16>
    %18 = vector.extract_strided_slice %8 {offsets = [0, 32], sizes = [64, 8], strides = [1, 1]} : vector<64x96xbf16> to vector<64x8xbf16>
    %19 = vector.shape_cast %18 : vector<64x8xbf16> to vector<4x16x8xbf16>
    %20 = vector.extract_strided_slice %8 {offsets = [0, 40], sizes = [64, 8], strides = [1, 1]} : vector<64x96xbf16> to vector<64x8xbf16>
    %21 = vector.shape_cast %20 : vector<64x8xbf16> to vector<4x16x8xbf16>
    %22 = vector.extract_strided_slice %8 {offsets = [0, 48], sizes = [64, 8], strides = [1, 1]} : vector<64x96xbf16> to vector<64x8xbf16>
    %23 = vector.shape_cast %22 : vector<64x8xbf16> to vector<4x16x8xbf16>
    %24 = vector.extract_strided_slice %8 {offsets = [0, 56], sizes = [64, 8], strides = [1, 1]} : vector<64x96xbf16> to vector<64x8xbf16>
    %25 = vector.shape_cast %24 : vector<64x8xbf16> to vector<4x16x8xbf16>
    %26 = tpu.concatenate %19, %21, %23, %25 in 0 : vector<4x16x8xbf16>, vector<4x16x8xbf16>, vector<4x16x8xbf16>, vector<4x16x8xbf16> -> vector<16x16x8xbf16>
    %27 = vector.extract_strided_slice %8 {offsets = [0, 64], sizes = [64, 8], strides = [1, 1]} : vector<64x96xbf16> to vector<64x8xbf16>
    %28 = vector.shape_cast %27 : vector<64x8xbf16> to vector<4x16x8xbf16>
    %29 = vector.extract_strided_slice %8 {offsets = [0, 72], sizes = [64, 8], strides = [1, 1]} : vector<64x96xbf16> to vector<64x8xbf16>
    %30 = vector.shape_cast %29 : vector<64x8xbf16> to vector<4x16x8xbf16>
    %31 = vector.extract_strided_slice %8 {offsets = [0, 80], sizes = [64, 8], strides = [1, 1]} : vector<64x96xbf16> to vector<64x8xbf16>
    %32 = vector.shape_cast %31 : vector<64x8xbf16> to vector<4x16x8xbf16>
    %33 = vector.extract_strided_slice %8 {offsets = [0, 88], sizes = [64, 8], strides = [1, 1]} : vector<64x96xbf16> to vector<64x8xbf16>
    %34 = vector.shape_cast %33 : vector<64x8xbf16> to vector<4x16x8xbf16>
    %35 = tpu.concatenate %28, %30, %32, %34 in 0 : vector<4x16x8xbf16>, vector<4x16x8xbf16>, vector<4x16x8xbf16>, vector<4x16x8xbf16> -> vector<16x16x8xbf16>
    %cst_5 = arith.constant dense<0.000000e+00> : vector<16x16x16xf32>
    %36 = tpu.matmul %17, %26, %cst_5 {dimension_numbers = #tpu.dot_dimension_numbers<[2], [2], [1], [1], [0, 0, 0, 1, 1, 1], [0], [0]>} : vector<16x16x8xbf16>, vector<16x16x8xbf16>, vector<16x16x16xf32> -> vector<16x16x16xf32>
    %37 = vector.shape_cast %36 : vector<16x16x16xf32> to vector<4x1x4x16x16xf32>
    %c0_6 = arith.constant 0 : index
    %c0_7 = arith.constant 0 : index
    %c0_8 = arith.constant 0 : index
    %c0_9 = arith.constant 0 : index
    %38 = vector.load %arg4[%c0_6, %c0_7, %c0_8, %c0_9] : memref<4x4x16x16xf32, #tpu.memory_space<vmem>>, vector<4x4x16x16xf32>
    %39 = vector.shape_cast %38 : vector<4x4x16x16xf32> to vector<4x1x4x16x16xf32>
    %40 = arith.addf %37, %39 : vector<4x1x4x16x16xf32>
    %41 = vector.shape_cast %40 : vector<4x1x4x16x16xf32> to vector<16x16x16xf32>
    %cst_10 = arith.constant dense<0xFF800000> : vector<16x16xf32>
    %42 = vector.multi_reduction <maximumf>, %41, %cst_10 [2] : vector<16x16x16xf32> to vector<16x16xf32>
    %43 = vector.shape_cast %42 : vector<16x16xf32> to vector<16x16x1xf32>
    %44 = vector.broadcast %43 : vector<16x16x1xf32> to vector<16x16x16xf32>
    %45 = arith.subf %41, %44 : vector<16x16x16xf32>
    %46 = math.exp %45 : vector<16x16x16xf32>
    %cst_11 = arith.constant dense<0.000000e+00> : vector<16x16xf32>
    %47 = vector.multi_reduction <add>, %46, %cst_11 [2] : vector<16x16x16xf32> to vector<16x16xf32>
    %48 = vector.shape_cast %47 : vector<16x16xf32> to vector<16x16x1xf32>
    %49 = tpu.reciprocal %48 {approx = true} : vector<16x16x1xf32> -> vector<16x16x1xf32>
    %50 = vector.broadcast %49 : vector<16x16x1xf32> to vector<16x16x16xf32>
    %51 = arith.mulf %46, %50 : vector<16x16x16xf32>
    %52 = arith.truncf %51 : vector<16x16x16xf32> to vector<16x16x16xbf16>
    %cst_12 = arith.constant dense<0.000000e+00> : vector<16x16x8xf32>
    %53 = tpu.matmul %52, %35, %cst_12 {dimension_numbers = #tpu.dot_dimension_numbers<[2], [1], [1], [2], [0, 0, 0, 1, 1, 2], [0], [0]>} : vector<16x16x16xbf16>, vector<16x16x8xbf16>, vector<16x16x8xf32> -> vector<16x16x8xf32>
    %54 = arith.truncf %53 : vector<16x16x8xf32> to vector<16x16x8xbf16>
    %55 = vector.extract_strided_slice %54 {offsets = [0, 0, 0], sizes = [4, 16, 8], strides = [1, 1, 1]} : vector<16x16x8xbf16> to vector<4x16x8xbf16>
    %56 = vector.shape_cast %55 : vector<4x16x8xbf16> to vector<64x8xbf16>
    %57 = vector.extract_strided_slice %54 {offsets = [4, 0, 0], sizes = [4, 16, 8], strides = [1, 1, 1]} : vector<16x16x8xbf16> to vector<4x16x8xbf16>
    %58 = vector.shape_cast %57 : vector<4x16x8xbf16> to vector<64x8xbf16>
    %59 = vector.extract_strided_slice %54 {offsets = [8, 0, 0], sizes = [4, 16, 8], strides = [1, 1, 1]} : vector<16x16x8xbf16> to vector<4x16x8xbf16>
    %60 = vector.shape_cast %59 : vector<4x16x8xbf16> to vector<64x8xbf16>
    %61 = vector.extract_strided_slice %54 {offsets = [12, 0, 0], sizes = [4, 16, 8], strides = [1, 1, 1]} : vector<16x16x8xbf16> to vector<4x16x8xbf16>
    %62 = vector.shape_cast %61 : vector<4x16x8xbf16> to vector<64x8xbf16>
    %63 = tpu.concatenate %56, %58, %60, %62 in 1 : vector<64x8xbf16>, vector<64x8xbf16>, vector<64x8xbf16>, vector<64x8xbf16> -> vector<64x32xbf16>
    %c0_13 = arith.constant 0 : index
    %c0_14 = arith.constant 0 : index
    %64 = vector.load %arg5[%c0_13, %c0_14] : memref<32x128xbf16, #tpu.memory_space<vmem>>, vector<32x128xbf16>
    %cst_15 = arith.constant dense<0.000000e+00> : vector<64x128xf32>
    %65 = tpu.matmul %63, %64, %cst_15 {dimension_numbers = #tpu.dot_dimension_numbers<[1], [0], [0], [1], [0, 0, 1, 1], [], []>} : vector<64x32xbf16>, vector<32x128xbf16>, vector<64x128xf32> -> vector<64x128xf32>
    %c0_16 = arith.constant 0 : index
    %c0_17 = arith.constant 0 : index
    %66 = vector.load %arg6[%c0_16, %c0_17] : memref<1x128xf32, #tpu.memory_space<vmem>>, vector<1x128xf32>
    %67 = vector.shape_cast %66 : vector<1x128xf32> to vector<128xf32>
    %68 = vector.shape_cast %67 : vector<128xf32> to vector<1x128xf32>
    %69 = vector.broadcast %68 : vector<1x128xf32> to vector<64x128xf32>
    %70 = arith.addf %65, %69 : vector<64x128xf32>
    %c0_18 = arith.constant 0 : index
    %c0_19 = arith.constant 0 : index
    %71 = vector.load %arg7[%c0_18, %c0_19] : memref<64x128xf32, #tpu.memory_space<vmem>>, vector<64x128xf32>
    tpu.vector_store %arg7[%c0_18, %c0_19], %70 {strides = array<i32>} : memref<64x128xf32, #tpu.memory_space<vmem>>, vector<64x128xf32>,
    return
  }
  func.func @transform_0(%arg0: i32) -> (i32, i32) {
    %c0_i32 = arith.constant 0 : i32
    %c0_i32_0 = arith.constant 0 : i32
    return %arg0, %c0_i32 : i32, i32
  }
  func.func @transform_1(%arg0: i32) -> (i32, i32) {
    %c0_i32 = arith.constant 0 : i32
    %c0_i32_0 = arith.constant 0 : i32
    %c0_i32_1 = arith.constant 0 : i32
    return %c0_i32, %c0_i32_0 : i32, i32
  }
  func.func @transform_2(%arg0: i32) -> (i32, i32) {
    %c0_i32 = arith.constant 0 : i32
    %c0_i32_0 = arith.constant 0 : i32
    %c0_i32_1 = arith.constant 0 : i32
    return %c0_i32, %c0_i32_0 : i32, i32
  }
  func.func @transform_3(%arg0: i32) -> (i32, i32, i32, i32) {
    %c0_i32 = arith.constant 0 : i32
    %c0_i32_0 = arith.constant 0 : i32
    %c0_i32_1 = arith.constant 0 : i32
    %c0_i32_2 = arith.constant 0 : i32
    %c0_i32_3 = arith.constant 0 : i32
    return %c0_i32, %c0_i32_0, %c0_i32_1, %c0_i32_2 : i32, i32, i32, i32
  }
  func.func @transform_4(%arg0: i32) -> (i32, i32) {
    %c0_i32 = arith.constant 0 : i32
    %c0_i32_0 = arith.constant 0 : i32
    %c0_i32_1 = arith.constant 0 : i32
    return %c0_i32, %c0_i32_0 : i32, i32
  }
  func.func @transform_5(%arg0: i32) -> (i32, i32) {
    %c0_i32 = arith.constant 0 : i32
    %c0_i32_0 = arith.constant 0 : i32
    %c0_i32_1 = arith.constant 0 : i32
    return %c0_i32, %c0_i32_0 : i32, i32
  }
  func.func @transform_6(%arg0: i32) -> (i32, i32) {
    %c0_i32 = arith.constant 0 : i32
    %c0_i32_0 = arith.constant 0 : i32
    return %arg0, %c0_i32 : i32, i32
  }
}

</mosaic_0001>

<bundles_post_ra>
// kernel: tpu_custom_call.1
= control target key start
LH: loop header
LB: loop body
LE: loop exit
PB: predicated region body
PF: predicated region fallthrough
CT: control target
= control target key end

     0   :  { %11 = vsyncpa [#allocation3], 0  ;;  %s4303_s0 = inlined_call_operand.vmem [shape: bf16[128,128], index: 0, kind: input, shape index: {}]   ;;  %s4304_s1 = inlined_call_operand.vmem [shape: bf16[128,96], index: 1, kind: input, shape index: {}]   ;;  %s4305_s2 = inlined_call_operand.vmem [shape: f32[1,96], index: 2, kind: input, shape index: {}]   ;;  %s4306_s3 = inlined_call_operand.hbm [shape: f32[4,4,16,16], index: 3, kind: input, shape index: {}]   ;;  %s4307_s4 = inlined_call_operand.vmem [shape: bf16[32,128], index: 4, kind: input, shape index: {}]   ;;  %s4308_s5 = inlined_call_operand.vmem [shape: f32[1,128], index: 5, kind: input, shape index: {}]   ;;  %s4309_s6 = inlined_call_operand.hbm [shape: f32[128,128], index: 6, kind: output, shape index: {}]  }
   0x1   :  { %12 = vsyncpa [#allocation4], 0 }
   0x2   :  { %14 = vsyncpa [#allocation4 + $0x1], 0  ;;  %s3441_s21 = smov 0   ;;  %s3443_s22 = smov 0  }
   0x3   :  { %s3445_s23 = smov 0   ;;  %s3447_s24 = smov 0  }
   0x4 LB: > { %s3462_s25 = sadd.s32 4294967295, %s3389_s24   ;;  %s2713_s26 = sadd.s32 4294967294, %s3389_s24   ;;  %s3389_s24 = sphi %s3447_s24, %s4325_s24   ;;  %s3385_s23 = sphi %s3445_s23, %s4324_s23   ;;  %s3381_s22 = sphi %s3443_s22, %s4323_s22   ;;  %s3377_s21 = sphi %s3441_s21, %s4322_s21  }
   0x5   : > { %s3466_s27 = sadd.s32 1, %s3389_s24   ;;  %s158_s28 = sadd.s32 1, %s3385_s23 }
   0x6   : > { %s155_s29 = ssub.s32 %s3389_s24, %s3466_s27  ;;  %p168_p0 = scmp.ne.s32.totalorder %s3385_s23, %s3381_s22 }
   0x7   : > { %p156_p1 = scmp.eq.s32.totalorder %s155_s29, 0  ;;  %p169_p2 = scmp.eq.s32.totalorder %s3462_s25, 1 }
   0x8   : > { %p174_p3 = scmp.ne.s32.totalorder %s3381_s22, %s3377_s21  ;;  %p175_p4 = scmp.eq.s32.totalorder %s2713_s26, 1 }
   0x9   : > { %s3477_s30 = scalar_select %p156_p1, %s3385_s23, %s158_s28  }
   0xa   : > { %p3479_p5 = por %p169_p2, %p168_p0  ;;  %p3483_p6 = por %p175_p4, %p174_p3 }
   0xb   : > { %p2714_p7 = scmp.ge.s32.totalorder %s3389_s24, 1  ;;  %p182_p8 = scmp.lt.s32.totalorder %s3389_s24, 3 }
   0xc   : > { %s4313_s7 = scalar_select %p3479_p5, 1, 0 }
   0xd   : > { %s4314_s8 = scalar_select %p3483_p6, 1, 0 }
   0xe   : > { %p4310_p9 = scmp.eq.s32.totalorder %s3462_s25, 0  ;;  %p3490_p10 = pnand %p2714_p7, %p182_p8 }
   0xf   : > { %s3391_s10 = smov [#allocation2]   ;;  %s3295_s15 = scalar_lea.hbm %s4306_s3, 4096 }
  0x10   : > { %s4315_s9 = scalar_select %p3490_p10, 1, 0 }
  0x11   : > { %s200_s11 = sshll.u32 %s3391_s10, 4  ;;  %p3096_p11 = pneg %p3490_p10  ;;  %s201_s11 = int_to_ptr.vmem [resolvable:$true] %s200_s11 }
  0x12   : > { %p3296_p13 = scmp.ne.s32.totalorder %s4306_s3, %s3295_s15  ;;  %p3302_p3 = scmp.lt.u32.totalorder %s3295_s15, %s4306_s3 }
  0x13   : > { %p3498_p12 = pnand %p4310_p9, %p3096_p11 }
  0x15   : > { %p3297_p0 = pneg %p3498_p12 }
  0x17   : > { %p3298_p1 = pnand %p3297_p0, %p3296_p13 }
  0x19   : > { %p3299_p2 = pneg %p3298_p1 }
  0x1b   : > { %p3304_p4 = pnand %p3302_p3, %p3299_p2 }
  0x1d   : > { %3307 = shalt.err (!%p3304_p4)
}
  0x1e   : > { %s3308_s20 = scalar_lea.vmem %s201_s11, 4096  ;;  %p3316_p9 = scmp.lt.s32.totalorder %s201_s11, %s201_s11 }
  0x1f   : > { %p3309_p7 = scmp.ne.s32.totalorder %s201_s11, %s3308_s20  ;;  %p3317_p6 = scmp.lt.s32.totalorder %s3308_s20, %s3308_s20 }
  0x21   : > { %p3311_p8 = pnand %p3309_p7, %p3297_p0  ;;  %p3318_p5 = por %p3317_p6, %p3316_p9 }
  0x23   : > { %p3312_p11 = pneg %p3311_p8 }
  0x25   : > { %p3319_p10 = pnand %p3318_p5, %p3312_p11 }
  0x27   : > { %3322 = shalt.err (!%p3319_p10)
}
  0x28   : > { %s3392_s26 = smov 128   ;;  %s3393_s28 = smov 8  }
  0x29   : > { %3099 = dma.hbm_to_vmem [thread:$0]  (!%p3498_p12), %s4306_s3, 4096, %s201_s11, [#allocation3], %s3392_s26, %s3392_s26, %s3393_s28  }
  0x2a   : > { %p4317_p13 = scmp.ne.s32.totalorder %s4315_s9, 0 }
  0x2b   : > { %p4318_p1 = scmp.eq.s32.totalorder (!%p4317_p13), %s3462_s25, 0 }
  0x2c   : > { %231 = sbr.rel (%p4317_p13) target bundleno = 1687 (0x697), region = 44 }
  0x33   : > { %3368 = dma.done.wait (%p4318_p1), [#allocation3], 4096   ;;  %p4319_p0 = pmov %p4318_p1 }
  0x34   : > { %s2720_s13 = sshll.u32 %s3462_s25, 3  ;;  %v3153_v0 = vld [vmem:[%s4304_s1] sm:$0xff]   ;;  %v3154_v1 = vld [vmem:[%s4304_s1 + $0x8] sm:$0xff]   ;;  %v3155_v2 = vld [vmem:[%s4304_s1 + $0x10] sm:$0xff]   ;;  %s3394_s18 = smov 120   ;;  %v3395_v29 = vmov 0.0  }
  0x35   : > { %3370 = vsyncadd (%p4319_p0), [#allocation3], 4294963200  ;;  %p262_p5 = scmp.lt.s32.totalorder %s2720_s13, 15  ;;  %2862 = vmatprep.subr.bf16.mxu0 %v3153_v0  ;;  %v3156_v3 = vld [vmem:[%s4304_s1 + $0x18] sm:$0xff]   ;;  %v3157_v5 = vld [vmem:[%s4304_s1 + $0x20] sm:$0xff]   ;;  %2886 = vmatprep.subr.bf16.mxu1 %v3395_v29  ;;  %s3396_s19 = smov 112  }
  0x36   : > { %2863 = vmatpush3.bf16.msra.mxu0 %v3153_v0  ;;  %v3158_v6 = vld [vmem:[%s4304_s1 + $0x28] sm:$0xff]   ;;  %v3159_v7 = vld [vmem:[%s4304_s1 + $0x30] sm:$0xff]   ;;  %v3160_v8 = vld [vmem:[%s4304_s1 + $0x38] sm:$0xff]   ;;  %vm3397_vm0 = vmmov 0   ;;  %s3399_s26 = smov 104   ;;  %vm471_vm1 = vcmask 64512  }
  0x37   : > { %s4327_s13 = smov (!%p262_p5, %s2720_s13), 15  ;;  %2864 = vmatprep.subr.bf16.mxu0 %v3154_v1  ;;  %v2722_v13 = vld [vmem:[%s4305_s2] ss:$0 sm:$0xff]  ;;  %2888 = vmatprep.mubr.msk.bf16.mxu1 %vm3397_vm0, %v3395_v29  ;;  %s3400_s28 = smov 64   ;;  %vm1318_vm2 = vcmask 130048   ;;  %vm2511_vm3 = vcmask 195584  }
  0x38   : > { %s2721_s9 = sshll.u32 %s4327_s13, 2  ;;  %s3401_s29 = smov 8   ;;  %vm2543_vm4 = vcmask 261120  }
  0x39   : > { %s265_s20 = scalar_lea.vmem %s4303_s0, %s2721_s9  ;;  %s3402_s14 = smov 16  }
  0x3a   : > { %2865 = vmatpush3.bf16.msra.mxu0 %v3154_v1  ;;  %v3161_v4 = vld [vmem:[%s265_s20] sm:$0xff]   ;;  %v3162_v9 = vld [vmem:[%s265_s20 + $0x8] sm:$0xff]   ;;  %v3163_v10 = vld [vmem:[%s265_s20 + $0x10] sm:$0xff]   ;;  %s3403_s16 = smov 24   ;;  %s258_s9 = sand.u32 1, %s3381_s22  }
  0x3b   : > { %2866 = vmatprep.subr.bf16.mxu0 %v3155_v2  ;;  %2878 = vmatprep.mubr.bf16.mxu0 %v3161_v4  ;;  %v3164_v11 = vld [vmem:[%s265_s20 + $0x18] sm:$0xff]   ;;  %s3398_s20 = smov 96   ;;  %s2719_s11 = sshll.u32 %s258_s9, 6 }
  0x3c   : > { %p4320_p9 = scmp.ne.s32.totalorder %s4313_s7, 0  ;;  %s3404_s15 = smov [#allocation5]  }
  0x3d   : > { %s3327_s12 = sshll.u32 %s3404_s15, 4  ;;  %s3328_s12 = int_to_ptr.vmem [resolvable:$false] %s3327_s12 }
  0x3e   : > { %2867 = vmatpush3.bf16.msra.mxu0 %v3155_v2 }
  0x3f   : > { %2868 = vmatprep.subr.bf16.mxu0 %v3156_v3 }
  0x42   : > { %2869 = vmatpush3.bf16.msra.mxu0 %v3156_v3 }
  0x43   : > { %2870 = vmatprep.subr.bf16.mxu0 %v3157_v5 }
  0x46   : > { %2871 = vmatpush3.bf16.msra.mxu0 %v3157_v5 }
  0x47   : > { %2872 = vmatprep.subr.bf16.mxu0 %v3158_v6 }
  0x4a   : > { %2873 = vmatpush3.bf16.msra.mxu0 %v3158_v6 }
  0x4b   : > { %2874 = vmatprep.subr.bf16.mxu0 %v3159_v7 }
  0x4e   : > { %2875 = vmatpush3.bf16.msra.mxu0 %v3159_v7 }
  0x4f   : > { %2876 = vmatprep.subr.bf16.mxu0 %v3160_v8 }
  0x52   : > { %2877 = vmatpush3.bf16.msra.mxu0 %v3160_v8 }
  0x53   : > { %2916 = vmatprep.subr.bf16.mxu0 %v3395_v29 }
  0x55   : > { %2879 = vmatmul.mubr.bf16.vlgmr.msra.gmra.mrb[0].mxu0 %v3162_v9 }
  0x56   : > { %2882 = vmatprep.mubr.bf16.mxu0 %v3163_v10 }
  0x5d   : > { %2883 = vmatmul.mubr.bf16.gmra.mrb[4].mxu0 %v3164_v11 }
  0x5e   : > { %2918 = vmatprep.mubr.msk.bf16.mxu0 %vm3397_vm0, %v3395_v29 }
 0x128   : > { %v2880_v12 = vpop.f32.mrb[0].mxu0 }
 0x129   : > { %v406_v14 = vpop.f32.mrb[1].mxu0  ;;  %v415_v16 = vadd.f32 %v2880_v12, %v2722_v13 }
 0x12a   : > { %v2881_v15 = vpop.f32.mrb[2].mxu0  ;;  %v407_v19 = vadd.f32 %v2722_v13, %v406_v14 }
 0x12b   : > { %v418_v17 = vadd.f32 %v2881_v15, %v2722_v13  ;;  %v409_v18 = vpop.f32.mrb[3].mxu0 }
 0x12c   : > { %v410_v20 = vadd.f32 %v2722_v13, %v409_v18  ;;  %v1255_v18 = vld [vmem:[#allocation2 + $0x8] sm:$0xff] }
 0x12d   : > { %v3555_v21 = vpack.c.bf16 %v418_v17, %v415_v16  ;;  %v1254_v16 = vld [vmem:[#allocation2] sm:$0xff] }
 0x12e   : > { %v3557_v22 = vpack.c.bf16 %v410_v20, %v407_v19 }
 0x130   : > { %v2884_v23 = vpop.f32.mrb[4].mxu0  ;;  %445 = vrot.lane.b32.xlu0 %v3557_v22, %s3394_s18 }
 0x131   : > { %v422_v24 = vpop.f32.mrb[5].mxu0  ;;  %v431_v26 = vadd.f32 %v2884_v23, %v2722_v13 }
 0x132   : > { %v2885_v25 = vpop.f32.mrb[6].mxu0  ;;  %v423_v30 = vadd.f32 %v2722_v13, %v422_v24 }
 0x133   : > { %v434_v27 = vadd.f32 %v2885_v25, %v2722_v13  ;;  %v425_v28 = vpop.f32.mrb[7].mxu0 }
 0x134   : > { %v426_v31 = vadd.f32 %v2722_v13, %v425_v28  ;;  %447 = vrot.lane.b32.xlu0 %v3555_v21, %s3394_s18  ;;  %v1257_v28 = vld [vmem:[#allocation2 + $0x18] sm:$0xff] }
 0x135   : > { %v3563_v32 = vpack.c.bf16 %v434_v27, %v431_v26  ;;  %v1256_v26 = vld [vmem:[#allocation2 + $0x10] sm:$0xff] }
 0x136   : > { %v3565_v33 = vpack.c.bf16 %v426_v31, %v423_v30 }
 0x138   : > { %449 = vrot.lane.b32.xlu1 %v3565_v33, %s3394_s18  ;;  %453 = vrot.lane.b32.xlu0 %v3557_v22, %s3396_s19 }
 0x13c   : > { %451 = vrot.lane.b32.xlu1 %v3563_v32, %s3394_s18  ;;  %457 = vrot.lane.b32.xlu0 %v3565_v33, %s3396_s19 }
 0x140   : > { %455 = vrot.lane.b32.xlu1 %v3555_v21, %s3396_s19  ;;  %469 = vrot.lane.b32.xlu0 %v3557_v22, %s3398_s20 }
 0x144   : > { %459 = vrot.lane.b32.xlu1 %v3563_v32, %s3396_s19  ;;  %463 = vrot.lane.b32.xlu0 %v3555_v21, %s3399_s26  ;;  %s260_s19 = scalar_lea.vmem [#allocation5], %s2719_s11 }
 0x148   : > { %461 = vrot.lane.b32.xlu1 %v3557_v22, %s3399_s26  ;;  %465 = vrot.lane.b32.xlu0 %v3565_v33, %s3399_s26 }
 0x14c   : > { %519 = vrot.lane.b32.xlu1 %v3555_v21, %s3398_s20  ;;  %568 = vrot.lane.b32.xlu0 %v3565_v33, %s3398_s20 }
 0x150   : > { %467 = vrot.lane.b32.xlu1 %v3563_v32, %s3399_s26  ;;  %s2779_s26 = sshll.u32 %s3462_s25, 10  ;;  %s4261_s25 = scalar_lea.sflag [#allocation4], %s258_s9 }
 0x151   : > { %s4257_s13 = scalar_lea.hbm %s4309_s6, %s2779_s26 }
 0x154   : > { %617 = vrot.lane.b32.xlu1 %v3563_v32, %s3398_s20 }
 0x1a2   : > { %v3589_v34 = vpop.permute.xlu0 %445 }
 0x1a3   : > { %666 = vrot.lane.b32.xlu0 %v3589_v34, %s3398_s20 }
 0x1a6   : > { %v3593_v35 = vpop.permute.xlu0 %447 }
 0x1a7   : > { %715 = vrot.lane.b32.xlu1 %v3593_v35, %s3398_s20 }
 0x1aa   : > { %v3597_v36 = vpop.permute.xlu1 %449  ;;  %v3599_v37 = vpop.permute.xlu0 %453 }
 0x1ab   : > { %764 = vrot.lane.b32.xlu0 %v3597_v36, %s3398_s20 }
 0x1ae   : > { %v3603_v38 = vpop.permute.xlu1 %451  ;;  %v3605_v39 = vpop.permute.xlu0 %457 }
 0x1af   : > { %813 = vrot.lane.b32.xlu1 %v3603_v38, %s3398_s20  ;;  %862 = vrot.lane.b32.xlu0 %v3599_v37, %s3398_s20 }
 0x1b2   : > { %v3611_v40 = vpop.permute.xlu1 %455  ;;  %v470_v41 = vpop.permute.xlu0 %469 }
 0x1b3   : > { %911 = vrot.lane.b32.xlu1 %v3611_v40, %s3398_s20  ;;  %960 = vrot.lane.b32.xlu0 %v3605_v39, %s3398_s20  ;;  %v476_v42 = vsel %vm471_vm1, %v470_v41, 0 }
 0x1b4   : > { %2887 = vmatpush3.bf16.xpose.msra.mxu1 %v476_v42 }
 0x1b5   : > { %2892 = vmatprep.subr.bf16.mxu1 %v3395_v29 }
 0x1b6   : > { %v3619_v43 = vpop.permute.xlu1 %459  ;;  %v3623_v44 = vpop.permute.xlu0 %463 }
 0x1b7   : > { %1009 = vrot.lane.b32.xlu1 %v3619_v43, %s3398_s20 }
 0x1ba   : > { %v3625_v45 = vpop.permute.xlu1 %461  ;;  %v3635_v46 = vpop.permute.xlu0 %465 }
 0x1bb   : > { %1058 = vrot.lane.b32.xlu0 %v3625_v45, %s3398_s20  ;;  %2889 = vmatmul.mubr.msk.bf16.vlgmr.msra.gmra.mrb[0].mxu1 %vm471_vm1, %v3557_v22 }
 0x1bc   : > { %1107 = vrot.lane.b32.xlu1 %v3623_v44, %s3398_s20  ;;  %2894 = vmatprep.mubr.msk.bf16.mxu1 %vm3397_vm0, %v3395_v29 }
 0x1be   : > { %v520_v47 = vpop.permute.xlu1 %519  ;;  %v569_v50 = vpop.permute.xlu0 %568 }
 0x1bf   : > { %v525_v48 = vsel %vm471_vm1, %v520_v47, 0  ;;  %1156 = vrot.lane.b32.xlu0 %v3635_v46, %s3398_s20  ;;  %v574_v51 = vsel %vm471_vm1, %v569_v50, 0 }
 0x1c0   : > { %2893 = vmatpush3.bf16.xpose.msra.mxu1 %v525_v48 }
 0x1c1   : > { %2898 = vmatprep.subr.bf16.mxu1 %v3395_v29 }
 0x1c2   : > { %v3641_v49 = vpop.permute.xlu1 %467 }
 0x1c3   : > { %1205 = vrot.lane.b32.xlu1 %v3641_v49, %s3398_s20  ;;  %1734 = vrot.lane.b32.xlu0 %v3555_v21, %s3400_s28  ;;  %s2639_s20 = sshll.u32 %s260_s19, 4  ;;  %s4252_s20 = int_to_ptr.vmem [resolvable:$true] %s2639_s20 }
 0x1c4   : > { %p3330_p2 = scmp.lt.s32.totalorder %s4252_s20, %s3328_s12 }
 0x1c6   : > { %v618_v52 = vpop.permute.xlu1 %617 }
 0x1c7   : > { %2895 = vmatmul.mubr.msk.bf16.vlgmr.msra.gmra.mrb[4].mxu1 %vm471_vm1, %v3555_v21  ;;  %1687 = vrot.lane.b32.xlu1 %v3557_v22, %s3400_s28  ;;  %v623_v53 = vsel %vm471_vm1, %v618_v52, 0 }
 0x1c8   : > { %1828 = vrot.lane.b32.xlu0 %v3563_v32, %s3400_s28  ;;  %2899 = vmatpush3.bf16.xpose.msra.mxu1 %v574_v51  ;;  %v1260_v51 = vld [vmem:[#allocation2 + $0x30] sm:$0xff] }
 0x1c9   : > { %2900 = vmatprep.mubr.msk.bf16.mxu1 %vm3397_vm0, %v3395_v29  ;;  %2904 = vmatprep.subr.bf16.mxu1 %v3395_v29 }
 0x1cb   : > { %1781 = vrot.lane.b32.xlu1 %v3565_v33, %s3400_s28 }
 0x1cc   : > { %1922 = vrot.lane.b32.xlu0 %v3593_v35, %s3400_s28 }
 0x1cf   : > { %1875 = vrot.lane.b32.xlu1 %v3589_v34, %s3400_s28  ;;  %2901 = vmatmul.mubr.msk.bf16.vlgmr.msra.gmra.mrb[8].mxu1 %vm471_vm1, %v3565_v33 }
 0x1d0   : > { %2016 = vrot.lane.b32.xlu0 %v3603_v38, %s3400_s28  ;;  %2905 = vmatpush3.bf16.xpose.msra.mxu1 %v623_v53  ;;  %v1261_v53 = vld [vmem:[#allocation2 + $0x38] sm:$0xff] }
 0x1d1   : > { %2906 = vmatprep.mubr.msk.bf16.mxu1 %vm3397_vm0, %v3395_v29  ;;  %2910 = vmatprep.subr.bf16.mxu1 %v3395_v29 }
 0x1d3   : > { %2063 = vrot.lane.b32.xlu1 %v3599_v37, %s3400_s28 }
 0x1d4   : > { %2110 = vrot.lane.b32.xlu0 %v3611_v40, %s3400_s28 }
 0x1d7   : > { %2204 = vrot.lane.b32.xlu1 %v3619_v43, %s3400_s28  ;;  %2907 = vmatmul.mubr.msk.bf16.vlgmr.msra.gmra.mrb[12].mxu1 %vm471_vm1, %v3563_v32 }
 0x1d8   : > { %2912 = vmatprep.mubr.msk.bf16.mxu1 %vm3397_vm0, %v3395_v29 }
 0x1db   : > { %1969 = vrot.lane.b32.xlu1 %v3597_v36, %s3400_s28 }
 0x1df   : > { %2157 = vrot.lane.b32.xlu1 %v3605_v39, %s3400_s28 }
 0x215   : > { %v667_v54 = vpop.permute.xlu0 %666 }
 0x216   : > { %v672_v55 = vsel %vm471_vm1, %v667_v54, 0 }
 0x217   : > { %2911 = vmatpush3.bf16.xpose.msra.mxu1 %v672_v55 }
 0x218   : > { %2922 = vmatprep.subr.bf16.mxu1 %v3395_v29 }
 0x219   : > { %v716_v56 = vpop.permute.xlu1 %715 }
 0x21a   : > { %v721_v57 = vsel %vm471_vm1, %v716_v56, 0 }
 0x21b   : > { %2917 = vmatpush3.bf16.xpose.msra.mxu0 %v721_v57 }
 0x21c   : > { %2928 = vmatprep.subr.bf16.mxu0 %v3395_v29 }
 0x21d   : > { %v765_v58 = vpop.permute.xlu0 %764 }
 0x21e   : > { %v770_v59 = vsel %vm471_vm1, %v765_v58, 0  ;;  %2913 = vmatmul.mubr.msk.bf16.vlgmr.msra.gmra.mrb[16].mxu1 %vm471_vm1, %v3589_v34 }
 0x21f   : > { %2923 = vmatpush3.bf16.xpose.msra.mxu1 %v770_v59  ;;  %2924 = vmatprep.mubr.msk.bf16.mxu1 %vm3397_vm0, %v3395_v29 }
 0x220   : > { %2934 = vmatprep.subr.bf16.mxu1 %v3395_v29 }
 0x221   : > { %v814_v60 = vpop.permute.xlu1 %813  ;;  %v863_v62 = vpop.permute.xlu0 %862 }
 0x222   : > { %v819_v61 = vsel %vm471_vm1, %v814_v60, 0  ;;  %2919 = vmatmul.mubr.msk.bf16.vlgmr.msra.gmra.mrb[8].mxu0 %vm471_vm1, %v3593_v35  ;;  %v868_v63 = vsel %vm471_vm1, %v863_v62, 0 }
 0x223   : > { %2929 = vmatpush3.bf16.xpose.msra.mxu0 %v819_v61  ;;  %2930 = vmatprep.mubr.msk.bf16.mxu0 %vm3397_vm0, %v3395_v29 }
 0x224   : > { %2940 = vmatprep.subr.bf16.mxu0 %v3395_v29 }
 0x225   : > { %v912_v0 = vpop.permute.xlu1 %911  ;;  %v961_v2 = vpop.permute.xlu0 %960 }
 0x226   : > { %2925 = vmatmul.mubr.msk.bf16.vlgmr.msra.gmra.mrb[20].mxu1 %vm471_vm1, %v3597_v36  ;;  %v917_v1 = vsel %vm471_vm1, %v912_v0, 0  ;;  %v966_v3 = vsel %vm471_vm1, %v961_v2, 0  ;;  %v1258_v36 = vld [vmem:[#allocation2 + $0x20] sm:$0xff]  ;;  %v1264_v0 = vld [vmem:[#allocation2 + $0x50] sm:$0xff] }
 0x227   : > { %2935 = vmatpush3.bf16.xpose.msra.mxu1 %v868_v63  ;;  %2936 = vmatprep.mubr.msk.bf16.mxu1 %vm3397_vm0, %v3395_v29  ;;  %v1262_v2 = vld [vmem:[#allocation2 + $0x40] sm:$0xff] }
 0x228   : > { %2946 = vmatprep.subr.bf16.mxu1 %v3395_v29 }
 0x229   : > { %v1010_v4 = vpop.permute.xlu1 %1009 }
 0x22a   : > { %2931 = vmatmul.mubr.msk.bf16.vlgmr.msra.gmra.mrb[12].mxu0 %vm471_vm1, %v3603_v38  ;;  %v1015_v5 = vsel %vm471_vm1, %v1010_v4, 0  ;;  %v1265_v4 = vld [vmem:[#allocation2 + $0x58] sm:$0xff] }
 0x22b   : > { %2941 = vmatpush3.bf16.xpose.msra.mxu0 %v917_v1  ;;  %2942 = vmatprep.mubr.msk.bf16.mxu0 %vm3397_vm0, %v3395_v29 }
 0x22c   : > { %2952 = vmatprep.subr.bf16.mxu0 %v3395_v29 }
 0x22d   : > { %v1059_v6 = vpop.permute.xlu0 %1058 }
 0x22e   : > { %2937 = vmatmul.mubr.msk.bf16.vlgmr.msra.gmra.mrb[24].mxu1 %vm471_vm1, %v3599_v37  ;;  %v1064_v7 = vsel %vm471_vm1, %v1059_v6, 0  ;;  %v1108_v8 = vpop.permute.xlu1 %1107 }
 0x22f   : > { %2947 = vmatpush3.bf16.xpose.msra.mxu1 %v966_v3  ;;  %2948 = vmatprep.mubr.msk.bf16.mxu1 %vm3397_vm0, %v3395_v29  ;;  %v1113_v9 = vsel %vm471_vm1, %v1108_v8, 0 }
 0x230   : > { %2958 = vmatprep.subr.bf16.mxu1 %v3395_v29 }
 0x231   : > { %v1157_v10 = vpop.permute.xlu0 %1156 }
 0x232   : > { %2943 = vmatmul.mubr.msk.bf16.vlgmr.msra.gmra.mrb[16].mxu0 %vm471_vm1, %v3611_v40  ;;  %v1162_v11 = vsel %vm471_vm1, %v1157_v10, 0 }
 0x233   : > { %2953 = vmatpush3.bf16.xpose.msra.mxu0 %v1015_v5  ;;  %2954 = vmatprep.mubr.msk.bf16.mxu0 %vm3397_vm0, %v3395_v29 }
 0x234   : > { %2964 = vmatprep.subr.bf16.mxu0 %v3395_v29 }
 0x235   : > { %v1206_v12 = vpop.permute.xlu1 %1205  ;;  %v1735_v15 = vpop.permute.xlu0 %1734 }
 0x236   : > { %2949 = vmatmul.mubr.msk.bf16.vlgmr.msra.gmra.mrb[28].mxu1 %vm471_vm1, %v3605_v39  ;;  %v1211_v13 = vsel %vm471_vm1, %v1206_v12, 0  ;;  %v1259_v39 = vld [vmem:[#allocation2 + $0x28] sm:$0xff] }
 0x237   : > { %2959 = vmatpush3.bf16.xpose.msra.mxu1 %v1064_v7  ;;  %2960 = vmatprep.mubr.msk.bf16.mxu1 %vm3397_vm0, %v3395_v29  ;;  %v1263_v7 = vld [vmem:[#allocation2 + $0x48] sm:$0xff] }
 0x238   : > { %2970 = vmatprep.subr.bf16.mxu1 %v3395_v29 }
 0x239   : > { %v1688_v14 = vpop.permute.xlu1 %1687 }
 0x23a   : > { %2955 = vmatmul.mubr.msk.bf16.vlgmr.msra.gmra.mrb[20].mxu0 %vm471_vm1, %v3619_v43 }
 0x23b   : > { %2965 = vmatpush3.bf16.xpose.msra.mxu0 %v1113_v9  ;;  %2966 = vmatprep.mubr.msk.bf16.mxu0 %vm3397_vm0, %v3395_v29 }
 0x23c   : > { %2976 = vmatprep.subr.bf16.mxu0 %v3395_v29 }
 0x23e   : > { %2961 = vmatmul.mubr.msk.bf16.vlgmr.msra.gmra.mrb[32].mxu1 %vm471_vm1, %v3625_v45 }
 0x23f   : > { %2971 = vmatpush3.bf16.xpose.msra.mxu1 %v1162_v11  ;;  %2972 = vmatprep.mubr.msk.bf16.mxu1 %vm3397_vm0, %v3395_v29 }
 0x240   : > { %2982 = vmatprep.subr.bf16.mxu1 %v3395_v29 }
 0x242   : > { %2967 = vmatmul.mubr.msk.bf16.vlgmr.msra.gmra.mrb[24].mxu0 %vm471_vm1, %v3623_v44 }
 0x243   : > { %2977 = vmatpush3.bf16.xpose.msra.mxu0 %v1211_v13  ;;  %2978 = vmatprep.mubr.msk.bf16.mxu0 %vm3397_vm0, %v3395_v29 }
 0x244   : > { %2988 = vmatprep.subr.bf16.mxu0 %v3395_v29 }
 0x246   : > { %2973 = vmatmul.mubr.msk.bf16.vlgmr.msra.gmra.mrb[36].mxu1 %vm471_vm1, %v3635_v46 }
 0x247   : > { %2983 = vmatpush3.bf16.msra.mxu1 %v1688_v14  ;;  %2984 = vmatprep.mubr.msk.bf16.mxu1 %vm3397_vm0, %v3395_v29 }
 0x248   : > { %2994 = vmatprep.subr.bf16.mxu1 %v3395_v29 }
 0x24a   : > { %2979 = vmatmul.mubr.msk.bf16.vlgmr.msra.gmra.mrb[28].mxu0 %vm471_vm1, %v3641_v49 }
 0x24b   : > { %2989 = vmatpush3.bf16.msra.mxu0 %v1735_v15  ;;  %2990 = vmatprep.mubr.msk.bf16.mxu0 %vm3397_vm0, %v3395_v29 }
 0x24c   : > { %3000 = vmatprep.subr.bf16.mxu0 %v3395_v29 }
 0x28e   : > { %v512_v17 = vpop.f32.mrb[0].mxu1 }
 0x28f   : > { %v3759_v19 = vadd.f32 %v1254_v16, %v512_v17  ;;  %v2890_v20 = vpop.f32.mrb[1].mxu1 }
 0x290   : > { %v515_v21 = vpop.f32.mrb[2].mxu1 }
 0x291   : > { %v3761_v22 = vadd.f32 %v1255_v18, %v515_v21  ;;  %v2891_v23 = vpop.f32.mrb[3].mxu1  ;;  %v1319_v24 = vsel %vm1318_vm2, %v3759_v19, -inf  ;;  %v1268_v18 = vld [vmem:[#allocation2 + $0x70] sm:$0xff] }
 0x292   : > { %1320 = vmax.xlane.f32.xlu0 %v1319_v24  ;;  %v1266_v23 = vld [vmem:[#allocation2 + $0x60] sm:$0xff] }
 0x293   : > { %v1322_v25 = vsel %vm1318_vm2, %v3761_v22, -inf }
 0x294   : > { %1323 = vmax.xlane.f32.xlu1 %v1322_v25  ;;  %v1269_v25 = vld [vmem:[#allocation2 + $0x78] sm:$0xff] }
 0x29a   : > { %v561_v27 = vpop.f32.mrb[4].mxu1 }
 0x29b   : > { %v3767_v30 = vadd.f32 %v1256_v26, %v561_v27  ;;  %v2896_v31 = vpop.f32.mrb[5].mxu1 }
 0x29c   : > { %v564_v32 = vpop.f32.mrb[6].mxu1  ;;  %v1267_v31 = vld [vmem:[#allocation2 + $0x68] sm:$0xff] }
 0x29d   : > { %v3769_v33 = vadd.f32 %v1257_v28, %v564_v32  ;;  %v2897_v34 = vpop.f32.mrb[7].mxu1  ;;  %v1325_v35 = vsel %vm1318_vm2, %v3767_v30, -inf }
 0x29e   : > { %1326 = vmax.xlane.f32.xlu0 %v1325_v35 }
 0x29f   : > { %v1328_v37 = vsel %vm1318_vm2, %v3769_v33, -inf }
 0x2a2   : > { %1329 = vmax.xlane.f32.xlu0 %v1328_v37  ;;  %v610_v38 = vpop.f32.mrb[8].mxu1 }
 0x2a3   : > { %v3775_v40 = vadd.f32 %v1258_v36, %v610_v38  ;;  %v2902_v41 = vpop.f32.mrb[9].mxu1 }
 0x2a4   : > { %v613_v42 = vpop.f32.mrb[10].mxu1 }
 0x2a5   : > { %v3777_v43 = vadd.f32 %v1259_v39, %v613_v42  ;;  %v2903_v47 = vpop.f32.mrb[11].mxu1  ;;  %v1331_v48 = vsel %vm1318_vm2, %v3775_v40, -inf }
 0x2a6   : > { %1332 = vmax.xlane.f32.xlu1 %v1331_v48  ;;  %v1272_v48 = vld [vmem:[#allocation2 + $0x90] sm:$0xff] }
 0x2a7   : > { %v1334_v50 = vsel %vm1318_vm2, %v3777_v43, -inf }
 0x2a8   : > { %1335 = vmax.xlane.f32.xlu0 %v1334_v50 }
 0x2aa   : > { %v659_v52 = vpop.f32.mrb[12].mxu1 }
 0x2ab   : > { %v3783_v54 = vadd.f32 %v1260_v51, %v659_v52  ;;  %v2908_v55 = vpop.f32.mrb[13].mxu1  ;;  %v1270_v52 = vld [vmem:[#allocation2 + $0x80] sm:$0xff] }
 0x2ac   : > { %v662_v56 = vpop.f32.mrb[14].mxu1  ;;  %v1273_v55 = vld [vmem:[#allocation2 + $0x98] sm:$0xff] }
 0x2ad   : > { %v3785_v57 = vadd.f32 %v1261_v53, %v662_v56  ;;  %v2909_v58 = vpop.f32.mrb[15].mxu1  ;;  %v1337_v59 = vsel %vm1318_vm2, %v3783_v54, -inf }
 0x2ae   : > { %1338 = vmax.xlane.f32.xlu1 %v1337_v59 }
 0x2af   : > { %v1340_v60 = vsel %vm1318_vm2, %v3785_v57, -inf }
 0x2b0   : > { %1341 = vmax.xlane.f32.xlu0 %v1340_v60  ;;  %v1271_v60 = vld [vmem:[#allocation2 + $0x88] sm:$0xff] }
 0x2f1   : > { %v708_v61 = vpop.f32.mrb[16].mxu1 }
 0x2f2   : > { %v2914_v62 = vpop.f32.mrb[17].mxu1  ;;  %v3793_v9 = vadd.f32 %v1262_v2, %v708_v61 }
 0x2f3   : > { %v711_v63 = vpop.f32.mrb[18].mxu1 }
 0x2f4   : > { %v2915_v1 = vpop.f32.mrb[19].mxu1  ;;  %v3799_v14 = vadd.f32 %v1263_v7, %v711_v63  ;;  %v1343_v21 = vsel %vm1318_vm2, %v3793_v9, -inf }
 0x2f5   : > { %v757_v3 = vpop.f32.mrb[8].mxu0 }
 0x2f6   : > { %v3791_v5 = vadd.f32 %v1264_v0, %v757_v3  ;;  %v2920_v6 = vpop.f32.mrb[9].mxu0  ;;  %v1346_v28 = vsel %vm1318_vm2, %v3799_v14, -inf }
 0x2f7   : > { %v760_v8 = vpop.f32.mrb[10].mxu0 }
 0x2f8   : > { %v3795_v10 = vadd.f32 %v1265_v4, %v760_v8  ;;  %v2921_v11 = vpop.f32.mrb[11].mxu0  ;;  %v1349_v12 = vsel %vm1318_vm2, %v3791_v5, -inf  ;;  %v1276_v8 = vld [vmem:[#allocation2 + $0xb0] sm:$0xff] }
 0x2f9   : > { %1350 = vmax.xlane.f32.xlu1 %v1349_v12  ;;  %v806_v13 = vpop.f32.mrb[20].mxu1 }
 0x2fa   : > { %v2926_v15 = vpop.f32.mrb[21].mxu1  ;;  %v1352_v16 = vsel %vm1318_vm2, %v3795_v10, -inf  ;;  %v3809_v34 = vadd.f32 %v1266_v23, %v806_v13  ;;  %v1274_v13 = vld [vmem:[#allocation2 + $0xa0] sm:$0xff] }
 0x2fb   : > { %1353 = vmax.xlane.f32.xlu0 %v1352_v16  ;;  %v809_v17 = vpop.f32.mrb[22].mxu1  ;;  %v1277_v16 = vld [vmem:[#allocation2 + $0xb8] sm:$0xff] }
 0x2fc   : > { %v2927_v20 = vpop.f32.mrb[23].mxu1  ;;  %v3815_v39 = vadd.f32 %v1267_v31, %v809_v17  ;;  %v1355_v51 = vsel %vm1318_vm2, %v3809_v34, -inf }
 0x2fd   : > { %v855_v24 = vpop.f32.mrb[12].mxu0  ;;  %1344 = vmax.xlane.f32.xlu1 %v1343_v21  ;;  %v1275_v21 = vld [vmem:[#allocation2 + $0xa8] sm:$0xff] }
 0x2fe   : > { %v3805_v26 = vadd.f32 %v1268_v18, %v855_v24  ;;  %v2932_v27 = vpop.f32.mrb[13].mxu0  ;;  %v1358_v59 = vsel %vm1318_vm2, %v3815_v39, -inf }
 0x2ff   : > { %v858_v32 = vpop.f32.mrb[14].mxu0  ;;  %1347 = vmax.xlane.f32.xlu0 %v1346_v28 }
 0x300   : > { %v3811_v35 = vadd.f32 %v1269_v25, %v858_v32  ;;  %v2933_v36 = vpop.f32.mrb[15].mxu0  ;;  %v1361_v37 = vsel %vm1318_vm2, %v3805_v26, -inf }
 0x301   : > { %1362 = vmax.xlane.f32.xlu1 %v1361_v37  ;;  %v904_v38 = vpop.f32.mrb[24].mxu1 }
 0x302   : > { %v2938_v41 = vpop.f32.mrb[25].mxu1  ;;  %v1364_v42 = vsel %vm1318_vm2, %v3811_v35, -inf  ;;  %v3825_v62 = vadd.f32 %v1270_v52, %v904_v38 }
 0x303   : > { %1365 = vmax.xlane.f32.xlu0 %v1364_v42  ;;  %v907_v47 = vpop.f32.mrb[26].mxu1  ;;  %v1280_v41 = vld [vmem:[#allocation2 + $0xd0] sm:$0xff] }
 0x304   : > { %v2939_v50 = vpop.f32.mrb[27].mxu1  ;;  %v3831_v3 = vadd.f32 %v1271_v60, %v907_v47  ;;  %v1367_v12 = vsel %vm1318_vm2, %v3825_v62, -inf }
 0x305   : > { %v953_v53 = vpop.f32.mrb[16].mxu0  ;;  %1356 = vmax.xlane.f32.xlu1 %v1355_v51  ;;  %v1281_v51 = vld [vmem:[#allocation2 + $0xd8] sm:$0xff] }
 0x306   : > { %v3821_v56 = vadd.f32 %v1272_v48, %v953_v53  ;;  %v2944_v58 = vpop.f32.mrb[17].mxu0  ;;  %v1370_v20 = vsel %vm1318_vm2, %v3831_v3, -inf  ;;  %v1278_v48 = vld [vmem:[#allocation2 + $0xc0] sm:$0xff] }
 0x307   : > { %v956_v61 = vpop.f32.mrb[18].mxu0  ;;  %1359 = vmax.xlane.f32.xlu0 %v1358_v59  ;;  %v1279_v58 = vld [vmem:[#allocation2 + $0xc8] sm:$0xff] }
 0x308   : > { %v3827_v63 = vadd.f32 %v1273_v55, %v956_v61  ;;  %v2945_v0 = vpop.f32.mrb[19].mxu0  ;;  %v1373_v1 = vsel %vm1318_vm2, %v3821_v56, -inf }
 0x309   : > { %1374 = vmax.xlane.f32.xlu1 %v1373_v1  ;;  %v1002_v2 = vpop.f32.mrb[28].mxu1 }
 0x30a   : > { %v2950_v4 = vpop.f32.mrb[29].mxu1  ;;  %v1376_v6 = vsel %vm1318_vm2, %v3827_v63, -inf  ;;  %v3841_v24 = vadd.f32 %v1274_v13, %v1002_v2 }
 0x30b   : > { %1377 = vmax.xlane.f32.xlu0 %v1376_v6  ;;  %v1005_v7 = vpop.f32.mrb[30].mxu1 }
 0x30c   : > { %v2951_v11 = vpop.f32.mrb[31].mxu1  ;;  %v3847_v32 = vadd.f32 %v1275_v21, %v1005_v7  ;;  %v1379_v47 = vsel %vm1318_vm2, %v3841_v24, -inf }
 0x30d   : > { %v1051_v15 = vpop.f32.mrb[20].mxu0  ;;  %1368 = vmax.xlane.f32.xlu1 %v1367_v12  ;;  %v1284_v11 = vld [vmem:[#allocation2 + $0xf0] sm:$0xff] }
 0x30e   : > { %v3837_v17 = vadd.f32 %v1276_v8, %v1051_v15  ;;  %v2956_v18 = vpop.f32.mrb[21].mxu0  ;;  %v1382_v55 = vsel %vm1318_vm2, %v3847_v32, -inf  ;;  %v1282_v15 = vld [vmem:[#allocation2 + $0xe0] sm:$0xff] }
 0x30f   : > { %v1054_v23 = vpop.f32.mrb[22].mxu0  ;;  %1371 = vmax.xlane.f32.xlu0 %v1370_v20  ;;  %v1285_v18 = vld [vmem:[#allocation2 + $0xf8] sm:$0xff] }
 0x310   : > { %v3843_v25 = vadd.f32 %v1277_v16, %v1054_v23  ;;  %v2957_v27 = vpop.f32.mrb[23].mxu0  ;;  %v1385_v28 = vsel %vm1318_vm2, %v3837_v17, -inf }
 0x311   : > { %1386 = vmax.xlane.f32.xlu1 %v1385_v28  ;;  %v1100_v31 = vpop.f32.mrb[32].mxu1  ;;  %v1283_v27 = vld [vmem:[#allocation2 + $0xe8] sm:$0xff] }
 0x312   : > { %v2962_v36 = vpop.f32.mrb[33].mxu1  ;;  %v1388_v37 = vsel %vm1318_vm2, %v3843_v25, -inf  ;;  %v3857_v60 = vadd.f32 %v1278_v48, %v1100_v31 }
 0x313   : > { %1389 = vmax.xlane.f32.xlu0 %v1388_v37  ;;  %v1103_v38 = vpop.f32.mrb[34].mxu1 }
 0x314   : > { %v2963_v42 = vpop.f32.mrb[35].mxu1  ;;  %v3863_v4 = vadd.f32 %v1279_v58, %v1103_v38  ;;  %v1391_v13 = vsel %vm1318_vm2, %v3857_v60, -inf }
 0x315   : > { %v1149_v50 = vpop.f32.mrb[24].mxu0  ;;  %1380 = vmax.xlane.f32.xlu1 %v1379_v47 }
 0x316   : > { %v3853_v52 = vadd.f32 %v1280_v41, %v1149_v50  ;;  %v2968_v53 = vpop.f32.mrb[25].mxu0  ;;  %v1394_v23 = vsel %vm1318_vm2, %v3863_v4, -inf  ;;  %v3879_v41 = vpop.permute.xlu1 %1781 }
 0x317   : > { %v1152_v59 = vpop.f32.mrb[26].mxu0  ;;  %1383 = vmax.xlane.f32.xlu0 %v1382_v55 }
 0x318   : > { %v3859_v61 = vadd.f32 %v1281_v51, %v1152_v59  ;;  %v2969_v0 = vpop.f32.mrb[27].mxu0  ;;  %v1397_v1 = vsel %vm1318_vm2, %v3853_v52, -inf  ;;  %v3889_v51 = vpop.permute.xlu0 %1828 }
 0x319   : > { %1398 = vmax.xlane.f32.xlu1 %v1397_v1  ;;  %v1198_v2 = vpop.f32.mrb[36].mxu1 }
 0x31a   : > { %v2974_v6 = vpop.f32.mrb[37].mxu1  ;;  %v1400_v7 = vsel %vm1318_vm2, %v3859_v61, -inf  ;;  %v3873_v31 = vadd.f32 %v1282_v15, %v1198_v2  ;;  %v3891_v53 = vpop.permute.xlu1 %1875 }
 0x31b   : > { %1401 = vmax.xlane.f32.xlu0 %v1400_v7  ;;  %v1201_v8 = vpop.f32.mrb[38].mxu1 }
 0x31c   : > { %v2975_v12 = vpop.f32.mrb[39].mxu1  ;;  %v3881_v42 = vadd.f32 %v1283_v27, %v1201_v8  ;;  %v1403_v48 = vsel %vm1318_vm2, %v3873_v31, -inf  ;;  %v3893_v55 = vpop.permute.xlu0 %1922 }
 0x31d   : > { %v1247_v16 = vpop.f32.mrb[28].mxu0  ;;  %1392 = vmax.xlane.f32.xlu1 %v1391_v13 }
 0x31e   : > { %v3869_v20 = vadd.f32 %v1284_v11, %v1247_v16  ;;  %v2980_v21 = vpop.f32.mrb[29].mxu0  ;;  %v1406_v50 = vsel %vm1318_vm2, %v3881_v42, -inf  ;;  %v3895_v58 = vpop.permute.xlu1 %2063 }
 0x31f   : > { %v1250_v28 = vpop.f32.mrb[30].mxu0  ;;  %1395 = vmax.xlane.f32.xlu0 %v1394_v23 }
 0x320   : > { %v3875_v36 = vadd.f32 %v1285_v18, %v1250_v28  ;;  %v2981_v37 = vpop.f32.mrb[31].mxu0  ;;  %v1409_v38 = vsel %vm1318_vm2, %v3869_v20, -inf  ;;  %v3897_v59 = vpop.permute.xlu0 %2016 }
 0x321   : > { %1410 = vmax.xlane.f32.xlu1 %v1409_v38 }
 0x322   : > { %v1412_v47 = vsel %vm1318_vm2, %v3875_v36, -inf  ;;  %v3899_v0 = vpop.permute.xlu1 %2204 }
 0x323   : > { %1413 = vmax.xlane.f32.xlu0 %v1412_v47 }
 0x324   : > { %v3903_v1 = vpop.permute.xlu0 %2110 }
 0x325   : > { %1404 = vmax.xlane.f32.xlu1 %v1403_v48 }
 0x326   : > { %v3905_v2 = vpop.permute.xlu1 %1969 }
 0x327   : > { %1407 = vmax.xlane.f32.xlu0 %v1406_v50 }
 0x328   : > { %v1321_v6 = vpop.xlane.xlu0 %1320 }
 0x329   : > { %v1415_v12 = vsub.f32 %v3759_v19, %v1321_v6 }
 0x32a   : > { %v3909_v7 = vpop.permute.xlu1 %2157 }
 0x32b   : > { %v1447_v16 = vmul.f32 1.442695, %v1415_v12 }
 0x32c   : > { %v1327_v8 = vpop.xlane.xlu0 %1326 }
 0x32d   : > { %3167 = vpow2.f32 %v1447_v16 }
 0x32e   : > { %v1324_v11 = vpop.xlane.xlu1 %1323 }
 0x32f   : > { %v1416_v13 = vsub.f32 %v3761_v22, %v1324_v11 }
 0x330   : > { %v1330_v15 = vpop.xlane.xlu0 %1329 }
 0x331   : > { %v1449_v21 = vmul.f32 1.442695, %v1416_v13  ;;  %v1418_v23 = vsub.f32 %v3769_v33, %v1330_v15 }
 0x333   : > { %v1333_v18 = vpop.xlane.xlu1 %1332  ;;  %3169 = vpow2.f32 %v1449_v21  ;;  %v1453_v38 = vmul.f32 1.442695, %v1418_v23 }
 0x335   : > { %v1336_v27 = vpop.xlane.xlu0 %1335 }
 0x336   : > { %2298 = vrot.lane.b32.xlu1 %v3623_v44, %s3400_s28  ;;  %v1417_v44 = vsub.f32 %v3767_v30, %v1327_v8  ;;  %v1420_v19 = vsub.f32 %v3777_v43, %v1336_v27 }
 0x337   : > { %v3919_v6 = vpop.eup %3167 }
 0x338   : > { %v1451_v28 = vmul.f32 1.442695, %v1417_v44  ;;  %v1457_v30 = vmul.f32 1.442695, %v1420_v19  ;;  %v1511_v43 = vsel %vm1318_vm2, %v3919_v6, 0.0 }
 0x33a   : > { %3171 = vpow2.f32 %v1451_v28 }
 0x33b   : > { %v1339_v37 = vpop.xlane.xlu1 %1338  ;;  %3173 = vpow2.f32 %v1453_v38 }
 0x33c   : > { %v1421_v48 = vsub.f32 %v3783_v54, %v1339_v37 }
 0x33d   : > { %2251 = vrot.lane.b32.xlu0 %v3625_v45, %s3400_s28  ;;  %v1419_v45 = vsub.f32 %v3775_v40, %v1333_v18  ;;  %v1342_v47 = vpop.xlane.xlu0 %1341  ;;  %v3921_v8 = vpop.eup %3169 }
 0x33e   : > { %v1422_v50 = vsub.f32 %v3785_v57, %v1342_v47  ;;  %v1459_v33 = vmul.f32 1.442695, %v1421_v48  ;;  %v1514_v54 = vsel %vm1318_vm2, %v3921_v8, 0.0 }
 0x33f   : > { %v1455_v22 = vmul.f32 1.442695, %v1419_v45 }
 0x340   : > { %v1461_v40 = vmul.f32 1.442695, %v1422_v50 }
 0x341   : > { %3175 = vpow2.f32 %v1455_v22 }
 0x342   : > { %3177 = vpow2.f32 %v1457_v30 }
 0x343   : > { %3179 = vpow2.f32 %v1459_v33 }
 0x344   : > { %v3925_v11 = vpop.eup %3171  ;;  %3181 = vpow2.f32 %v1461_v40 }
 0x345   : > { %v3929_v57 = vpop.eup %3173  ;;  %v1517_v12 = vsel %vm1318_vm2, %v3925_v11, 0.0 }
 0x346   : > { %v1520_v15 = vsel %vm1318_vm2, %v3929_v57, 0.0 }
 0x34b   : > { %v3933_v13 = vpop.eup %3175 }
 0x34c   : > { %v3937_v16 = vpop.eup %3177  ;;  %v1523_v44 = vsel %vm1318_vm2, %v3933_v13, 0.0 }
 0x34d   : > { %v3941_v18 = vpop.eup %3179  ;;  %v1526_v21 = vsel %vm1318_vm2, %v3937_v16, 0.0 }
 0x34e   : > { %v3945_v23 = vpop.eup %3181  ;;  %v1529_v27 = vsel %vm1318_vm2, %v3941_v18, 0.0 }
 0x34f   : > { %v1532_v28 = vsel %vm1318_vm2, %v3945_v23, 0.0 }
 0x35a   : > { %1512 = vadd.xlane.f32.xlu1 %v1511_v43 }
 0x35c   : > { %1515 = vadd.xlane.f32.xlu0 %v1514_v54 }
 0x35e   : > { %1518 = vadd.xlane.f32.xlu1 %v1517_v12 }
 0x360   : > { %1521 = vadd.xlane.f32.xlu0 %v1520_v15 }
 0x362   : > { %1524 = vadd.xlane.f32.xlu1 %v1523_v44 }
 0x364   : > { %1527 = vadd.xlane.f32.xlu0 %v1526_v21 }
 0x366   : > { %1530 = vadd.xlane.f32.xlu1 %v1529_v27 }
 0x368   : > { %1533 = vadd.xlane.f32.xlu0 %v1532_v28 }
 0x386   : > { %v1351_v45 = vpop.xlane.xlu1 %1350 }
 0x387   : > { %v1425_v37 = vsub.f32 %v3791_v5, %v1351_v45 }
 0x388   : > { %v1354_v38 = vpop.xlane.xlu0 %1353 }
 0x389   : > { %v1467_v19 = vmul.f32 1.442695, %v1425_v37  ;;  %v1426_v47 = vsub.f32 %v3795_v10, %v1354_v38 }
 0x38a   : > { %v1345_v22 = vpop.xlane.xlu1 %1344 }
 0x38b   : > { %3183 = vpow2.f32 %v1467_v19  ;;  %v1469_v48 = vmul.f32 1.442695, %v1426_v47  ;;  %v1423_v30 = vsub.f32 %v3793_v9, %v1345_v22 }
 0x38c   : > { %v1348_v50 = vpop.xlane.xlu0 %1347 }
 0x38d   : > { %3185 = vpow2.f32 %v1469_v48  ;;  %v1463_v33 = vmul.f32 1.442695, %v1423_v30  ;;  %v1424_v40 = vsub.f32 %v3799_v14, %v1348_v50 }
 0x38e   : > { %v1363_v43 = vpop.xlane.xlu1 %1362 }
 0x38f   : > { %3187 = vpow2.f32 %v1463_v33  ;;  %v1465_v54 = vmul.f32 1.442695, %v1424_v40  ;;  %v1429_v12 = vsub.f32 %v3805_v26, %v1363_v43 }
 0x390   : > { %v1366_v5 = vpop.xlane.xlu0 %1365 }
 0x391   : > { %3189 = vpow2.f32 %v1465_v54  ;;  %v1475_v15 = vmul.f32 1.442695, %v1429_v12  ;;  %v1430_v10 = vsub.f32 %v3811_v35, %v1366_v5 }
 0x392   : > { %v1357_v44 = vpop.xlane.xlu1 %1356 }
 0x393   : > { %3191 = vpow2.f32 %v1475_v15  ;;  %v1477_v21 = vmul.f32 1.442695, %v1430_v10  ;;  %v1427_v9 = vsub.f32 %v3809_v34, %v1357_v44 }
 0x394   : > { %v1360_v27 = vpop.xlane.xlu0 %1359 }
 0x395   : > { %v3958_v28 = vpop.eup %3183  ;;  %3193 = vpow2.f32 %v1477_v21  ;;  %v1471_v14 = vmul.f32 1.442695, %v1427_v9  ;;  %v1428_v45 = vsub.f32 %v3815_v39, %v1360_v27 }
 0x396   : > { %v1375_v37 = vpop.xlane.xlu1 %1374  ;;  %v1541_v26 = vsel %vm1318_vm2, %v3958_v28, 0.0 }
 0x397   : > { %v3963_v38 = vpop.eup %3185  ;;  %3195 = vpow2.f32 %v1471_v14  ;;  %v1473_v35 = vmul.f32 1.442695, %v1428_v45  ;;  %v1433_v19 = vsub.f32 %v3821_v56, %v1375_v37  ;;  %1542 = vadd.xlane.f32.xlu1 %v1541_v26 }
 0x398   : > { %v1378_v47 = vpop.xlane.xlu0 %1377  ;;  %v1544_v34 = vsel %vm1318_vm2, %v3963_v38, 0.0 }
 0x399   : > { %v3968_v22 = vpop.eup %3187  ;;  %3197 = vpow2.f32 %v1473_v35  ;;  %v1483_v48 = vmul.f32 1.442695, %v1433_v19  ;;  %v1434_v39 = vsub.f32 %v3827_v63, %v1378_v47  ;;  %1545 = vadd.xlane.f32.xlu0 %v1544_v34 }
 0x39a   : > { %v1369_v30 = vpop.xlane.xlu1 %1368  ;;  %v1535_v50 = vsel %vm1318_vm2, %v3968_v22, 0.0 }
 0x39b   : > { %v3973_v33 = vpop.eup %3189  ;;  %3199 = vpow2.f32 %v1483_v48  ;;  %v1485_v56 = vmul.f32 1.442695, %v1434_v39  ;;  %v1431_v40 = vsub.f32 %v3825_v62, %v1369_v30  ;;  %1536 = vadd.xlane.f32.xlu1 %v1535_v50 }
 0x39c   : > { %v1372_v43 = vpop.xlane.xlu0 %1371  ;;  %v1538_v54 = vsel %vm1318_vm2, %v3973_v33, 0.0 }
 0x39d   : > { %v3978_v12 = vpop.eup %3191  ;;  %3201 = vpow2.f32 %v1485_v56  ;;  %v1479_v63 = vmul.f32 1.442695, %v1431_v40  ;;  %v1432_v5 = vsub.f32 %v3831_v3, %v1372_v43  ;;  %1539 = vadd.xlane.f32.xlu0 %v1538_v54 }
 0x39e   : > { %v1387_v15 = vpop.xlane.xlu1 %1386  ;;  %v1553_v10 = vsel %vm1318_vm2, %v3978_v12, 0.0 }
 0x39f   : > { %v3983_v44 = vpop.eup %3193  ;;  %3203 = vpow2.f32 %v1479_v63  ;;  %v1481_v62 = vmul.f32 1.442695, %v1432_v5  ;;  %v1437_v21 = vsub.f32 %v3837_v17, %v1387_v15  ;;  %1554 = vadd.xlane.f32.xlu1 %v1553_v10 }
 0x3a0   : > { %v1390_v9 = vpop.xlane.xlu0 %1389  ;;  %v1556_v27 = vsel %vm1318_vm2, %v3983_v44, 0.0 }
 0x3a1   : > { %v3988_v14 = vpop.eup %3195  ;;  %3205 = vpow2.f32 %v1481_v62  ;;  %v1491_v3 = vmul.f32 1.442695, %v1437_v21  ;;  %v1438_v45 = vsub.f32 %v3843_v25, %v1390_v9  ;;  %1557 = vadd.xlane.f32.xlu0 %v1556_v27 }
 0x3a2   : > { %v1381_v37 = vpop.xlane.xlu1 %1380  ;;  %v1547_v26 = vsel %vm1318_vm2, %v3988_v14, 0.0 }
 0x3a3   : > { %v3993_v35 = vpop.eup %3197  ;;  %3207 = vpow2.f32 %v1491_v3  ;;  %v1493_v17 = vmul.f32 1.442695, %v1438_v45  ;;  %v1435_v19 = vsub.f32 %v3841_v24, %v1381_v37  ;;  %1548 = vadd.xlane.f32.xlu1 %v1547_v26 }
 0x3a4   : > { %v1384_v47 = vpop.xlane.xlu0 %1383  ;;  %v1550_v34 = vsel %vm1318_vm2, %v3993_v35, 0.0 }
 0x3a5   : > { %v3998_v48 = vpop.eup %3199  ;;  %3209 = vpow2.f32 %v1493_v17  ;;  %v1487_v25 = vmul.f32 1.442695, %v1435_v19  ;;  %v1436_v39 = vsub.f32 %v3847_v32, %v1384_v47  ;;  %1551 = vadd.xlane.f32.xlu0 %v1550_v34 }
 0x3a6   : > { %v1399_v30 = vpop.xlane.xlu1 %1398  ;;  %v1565_v50 = vsel %vm1318_vm2, %v3998_v48, 0.0 }
 0x3a7   : > { %v4003_v56 = vpop.eup %3201  ;;  %3211 = vpow2.f32 %v1487_v25  ;;  %v1489_v24 = vmul.f32 1.442695, %v1436_v39  ;;  %v1441_v40 = vsub.f32 %v3853_v52, %v1399_v30  ;;  %1566 = vadd.xlane.f32.xlu1 %v1565_v50 }
 0x3a8   : > { %v1402_v43 = vpop.xlane.xlu0 %1401  ;;  %v1568_v54 = vsel %vm1318_vm2, %v4003_v56, 0.0 }
 0x3a9   : > { %v4008_v63 = vpop.eup %3203  ;;  %3213 = vpow2.f32 %v1489_v24  ;;  %v1499_v32 = vmul.f32 1.442695, %v1441_v40  ;;  %v1442_v5 = vsub.f32 %v3859_v61, %v1402_v43  ;;  %1569 = vadd.xlane.f32.xlu0 %v1568_v54 }
 0x3aa   : > { %v1393_v15 = vpop.xlane.xlu1 %1392  ;;  %v1559_v10 = vsel %vm1318_vm2, %v4008_v63, 0.0 }
 0x3ab   : > { %v4013_v62 = vpop.eup %3205  ;;  %3215 = vpow2.f32 %v1499_v32  ;;  %v1501_v52 = vmul.f32 1.442695, %v1442_v5  ;;  %v1439_v21 = vsub.f32 %v3857_v60, %v1393_v15  ;;  %1560 = vadd.xlane.f32.xlu1 %v1559_v10 }
 0x3ac   : > { %v1396_v9 = vpop.xlane.xlu0 %1395  ;;  %v1562_v27 = vsel %vm1318_vm2, %v4013_v62, 0.0 }
 0x3ad   : > { %v4018_v3 = vpop.eup %3207  ;;  %3217 = vpow2.f32 %v1501_v52  ;;  %v1495_v61 = vmul.f32 1.442695, %v1439_v21  ;;  %v1440_v45 = vsub.f32 %v3863_v4, %v1396_v9  ;;  %1563 = vadd.xlane.f32.xlu0 %v1562_v27 }
 0x3ae   : > { %v1411_v37 = vpop.xlane.xlu1 %1410  ;;  %v1577_v26 = vsel %vm1318_vm2, %v4018_v3, 0.0 }
 0x3af   : > { %v4023_v17 = vpop.eup %3209  ;;  %3219 = vpow2.f32 %v1495_v61  ;;  %v1497_v60 = vmul.f32 1.442695, %v1440_v45  ;;  %v1445_v19 = vsub.f32 %v3869_v20, %v1411_v37  ;;  %1578 = vadd.xlane.f32.xlu1 %v1577_v26 }
 0x3b0   : > { %v1414_v47 = vpop.xlane.xlu0 %1413  ;;  %v1580_v34 = vsel %vm1318_vm2, %v4023_v17, 0.0 }
 0x3b1   : > { %v4028_v25 = vpop.eup %3211  ;;  %3221 = vpow2.f32 %v1497_v60  ;;  %v1507_v4 = vmul.f32 1.442695, %v1445_v19  ;;  %v1446_v39 = vsub.f32 %v3875_v36, %v1414_v47  ;;  %1581 = vadd.xlane.f32.xlu0 %v1580_v34 }
 0x3b2   : > { %v1405_v30 = vpop.xlane.xlu1 %1404  ;;  %v1571_v50 = vsel %vm1318_vm2, %v4028_v25, 0.0 }
 0x3b3   : > { %v4033_v24 = vpop.eup %3213  ;;  %3223 = vpow2.f32 %v1507_v4  ;;  %v1509_v20 = vmul.f32 1.442695, %v1446_v39  ;;  %v1443_v40 = vsub.f32 %v3873_v31, %v1405_v30  ;;  %1572 = vadd.xlane.f32.xlu1 %v1571_v50 }
 0x3b4   : > { %v1408_v43 = vpop.xlane.xlu0 %1407  ;;  %v1574_v54 = vsel %vm1318_vm2, %v4033_v24, 0.0 }
 0x3b5   : > { %v4038_v32 = vpop.eup %3215  ;;  %3225 = vpow2.f32 %v1509_v20  ;;  %v1503_v36 = vmul.f32 1.442695, %v1443_v40  ;;  %v1444_v5 = vsub.f32 %v3881_v42, %v1408_v43  ;;  %1575 = vadd.xlane.f32.xlu0 %v1574_v54 }
 0x3b6   : > { %v1589_v15 = vsel %vm1318_vm2, %v4038_v32, 0.0  ;;  %v4075_v4 = vpop.permute.xlu1 %2298 }
 0x3b7   : > { %v4043_v10 = vpop.eup %3217  ;;  %3227 = vpow2.f32 %v1503_v36  ;;  %v1505_v52 = vmul.f32 1.442695, %v1444_v5  ;;  %1590 = vadd.xlane.f32.xlu1 %v1589_v15 }
 0x3b8   : > { %v1592_v31 = vsel %vm1318_vm2, %v4043_v10, 0.0  ;;  %v4077_v39 = vpop.permute.xlu0 %2251 }
 0x3b9   : > { %v4047_v21 = vpop.eup %3219  ;;  %3229 = vpow2.f32 %v1505_v52  ;;  %1593 = vadd.xlane.f32.xlu0 %v1592_v31 }
 0x3ba   : > { %v1583_v9 = vsel %vm1318_vm2, %v4047_v21, 0.0 }
 0x3bb   : > { %v4051_v42 = vpop.eup %3221  ;;  %1584 = vadd.xlane.f32.xlu1 %v1583_v9 }
 0x3bc   : > { %v1586_v27 = vsel %vm1318_vm2, %v4051_v42, 0.0 }
 0x3bd   : > { %v4055_v61 = vpop.eup %3223  ;;  %1587 = vadd.xlane.f32.xlu0 %v1586_v27 }
 0x3be   : > { %v1601_v45 = vsel %vm1318_vm2, %v4055_v61, 0.0 }
 0x3bf   : > { %v4059_v37 = vpop.eup %3225  ;;  %1602 = vadd.xlane.f32.xlu1 %v1601_v45 }
 0x3c0   : > { %v1604_v26 = vsel %vm1318_vm2, %v4059_v37, 0.0 }
 0x3c1   : > { %v4063_v60 = vpop.eup %3227  ;;  %1605 = vadd.xlane.f32.xlu0 %v1604_v26 }
 0x3c2   : > { %v1595_v19 = vsel %vm1318_vm2, %v4063_v60, 0.0 }
 0x3c3   : > { %v4067_v47 = vpop.eup %3229  ;;  %1596 = vadd.xlane.f32.xlu1 %v1595_v19 }
 0x3c4   : > { %v1598_v34 = vsel %vm1318_vm2, %v4067_v47, 0.0 }
 0x3c5   : > { %1599 = vadd.xlane.f32.xlu0 %v1598_v34 }
 0x3d4   : > { %2392 = vrot.lane.b32.xlu1 %v3641_v49, %s3400_s28 }
 0x3db   : > { %2345 = vrot.lane.b32.xlu0 %v3635_v46, %s3400_s28 }
 0x3e7   : > { %v1513_v30 = vpop.xlane.xlu1 %1512 }
 0x3e8   : > { %3231 = vrcp.f32 %v1513_v30 }
 0x3e9   : > { %v1516_v50 = vpop.xlane.xlu0 %1515 }
 0x3ea   : > { %3233 = vrcp.f32 %v1516_v50 }
 0x3eb   : > { %v1519_v20 = vpop.xlane.xlu1 %1518 }
 0x3ec   : > { %3235 = vrcp.f32 %v1519_v20 }
 0x3ed   : > { %v1522_v40 = vpop.xlane.xlu0 %1521 }
 0x3ee   : > { %3237 = vrcp.f32 %v1522_v40 }
 0x3ef   : > { %v1525_v43 = vpop.xlane.xlu1 %1524 }
 0x3f0   : > { %3239 = vrcp.f32 %v1525_v43 }
 0x3f1   : > { %v1528_v54 = vpop.xlane.xlu0 %1527 }
 0x3f2   : > { %v3232_v36 = vpop.eup %3231  ;;  %3241 = vrcp.f32 %v1528_v54 }
 0x3f3   : > { %v1531_v49 = vpop.xlane.xlu1 %1530  ;;  %v1639_v46 = vmul.f32 %v3232_v36, %v3919_v6 }
 0x3f4   : > { %v3234_v5 = vpop.eup %3233  ;;  %3243 = vrcp.f32 %v1531_v49 }
 0x3f5   : > { %v1640_v15 = vmul.f32 %v3234_v5, %v3921_v8  ;;  %v1534_v52 = vpop.xlane.xlu0 %1533 }
 0x3f6   : > { %v3236_v31 = vpop.eup %3235  ;;  %3245 = vrcp.f32 %v1534_v52 }
 0x3f7   : > { %v1671_v9 = vpack.c.bf16 %v1640_v15, %v1639_v46  ;;  %v1641_v45 = vmul.f32 %v3236_v31, %v3925_v11 }
 0x3f8   : > { %v3238_v27 = vpop.eup %3237 }
 0x3f9   : > { %v1642_v26 = vmul.f32 %v3238_v27, %v3929_v57  ;;  %2985 = vmatmul.mubr.msk.bf16.vlgmr.msra.gmra.mrb[40].mxu1 %vm1318_vm2, %v1671_v9 }
 0x3fa   : > { %v3240_v19 = vpop.eup %3239  ;;  %2995 = vmatpush3.bf16.msra.mxu1 %v3879_v41  ;;  %2996 = vmatprep.mubr.msk.bf16.mxu1 %vm3397_vm0, %v3395_v29 }
 0x3fb   : > { %v1672_v6 = vpack.c.bf16 %v1642_v26, %v1641_v45  ;;  %3006 = vmatprep.subr.bf16.mxu1 %v3395_v29  ;;  %v1643_v34 = vmul.f32 %v3240_v19, %v3933_v13 }
 0x3fc   : > { %v3242_v8 = vpop.eup %3241 }
 0x3fd   : > { %v1644_v30 = vmul.f32 %v3242_v8, %v3937_v16  ;;  %2991 = vmatmul.mubr.msk.bf16.vlgmr.msra.gmra.mrb[32].mxu0 %vm1318_vm2, %v1672_v6 }
 0x3fe   : > { %v3244_v11 = vpop.eup %3243  ;;  %3001 = vmatpush3.bf16.msra.mxu0 %v3889_v51  ;;  %3002 = vmatprep.mubr.msk.bf16.mxu0 %vm3397_vm0, %v3395_v29 }
 0x3ff   : > { %v1673_v41 = vpack.c.bf16 %v1644_v30, %v1643_v34  ;;  %3012 = vmatprep.subr.bf16.mxu0 %v3395_v29  ;;  %v1645_v50 = vmul.f32 %v3244_v11, %v3941_v18 }
 0x400   : > { %v3246_v57 = vpop.eup %3245 }
 0x401   : > { %v1646_v20 = vmul.f32 %v3246_v57, %v3945_v23  ;;  %2997 = vmatmul.mubr.msk.bf16.vlgmr.msra.gmra.mrb[44].mxu1 %vm1318_vm2, %v1673_v41 }
 0x402   : > { %3007 = vmatpush3.bf16.msra.mxu1 %v3891_v53  ;;  %3008 = vmatprep.mubr.msk.bf16.mxu1 %vm3397_vm0, %v3395_v29 }
 0x403   : > { %v1674_v13 = vpack.c.bf16 %v1646_v20, %v1645_v50  ;;  %3018 = vmatprep.subr.bf16.mxu1 %v3395_v29 }
 0x405   : > { %3003 = vmatmul.mubr.msk.bf16.vlgmr.msra.gmra.mrb[36].mxu0 %vm1318_vm2, %v1674_v13 }
 0x406   : > { %3013 = vmatpush3.bf16.msra.mxu0 %v3893_v55  ;;  %3014 = vmatprep.mubr.msk.bf16.mxu0 %vm3397_vm0, %v3395_v29 }
 0x407   : > { %3024 = vmatprep.subr.bf16.mxu0 %v3395_v29 }
 0x424   : > { %v1543_v51 = vpop.xlane.xlu1 %1542 }
 0x425   : > { %3247 = vrcp.f32 %v1543_v51 }
 0x426   : > { %v1546_v16 = vpop.xlane.xlu0 %1545 }
 0x427   : > { %3249 = vrcp.f32 %v1546_v16 }
 0x428   : > { %v1537_v53 = vpop.xlane.xlu1 %1536 }
 0x429   : > { %3251 = vrcp.f32 %v1537_v53 }
 0x42a   : > { %v1540_v18 = vpop.xlane.xlu0 %1539 }
 0x42b   : > { %3253 = vrcp.f32 %v1540_v18 }
 0x42c   : > { %v1555_v23 = vpop.xlane.xlu1 %1554 }
 0x42d   : > { %3255 = vrcp.f32 %v1555_v23 }
 0x42e   : > { %v1558_v40 = vpop.xlane.xlu0 %1557 }
 0x42f   : > { %v3248_v43 = vpop.eup %3247  ;;  %3257 = vrcp.f32 %v1558_v40 }
 0x430   : > { %v1549_v54 = vpop.xlane.xlu1 %1548  ;;  %v1649_v36 = vmul.f32 %v3248_v43, %v3958_v28 }
 0x431   : > { %v3250_v55 = vpop.eup %3249  ;;  %3259 = vrcp.f32 %v1549_v54 }
 0x432   : > { %v1650_v49 = vmul.f32 %v3250_v55, %v3963_v38  ;;  %v1552_v5 = vpop.xlane.xlu0 %1551 }
 0x433   : > { %v3252_v46 = vpop.eup %3251  ;;  %3261 = vrcp.f32 %v1552_v5 }
 0x434   : > { %v1567_v15 = vpop.xlane.xlu1 %1566  ;;  %v1676_v52 = vpack.c.bf16 %v1650_v49, %v1649_v36  ;;  %v1647_v9 = vmul.f32 %v3252_v46, %v3968_v22 }
 0x435   : > { %v3254_v31 = vpop.eup %3253  ;;  %3263 = vrcp.f32 %v1567_v15 }
 0x436   : > { %v1648_v27 = vmul.f32 %v3254_v31, %v3973_v33  ;;  %3015 = vmatmul.mubr.msk.bf16.vlgmr.msra.gmra.mrb[40].mxu0 %vm1318_vm2, %v1676_v52  ;;  %v1570_v45 = vpop.xlane.xlu0 %1569 }
 0x437   : > { %v3256_v26 = vpop.eup %3255  ;;  %3025 = vmatpush3.bf16.msra.mxu0 %v3897_v59  ;;  %3265 = vrcp.f32 %v1570_v45  ;;  %3026 = vmatprep.mubr.msk.bf16.mxu0 %vm3397_vm0, %v3395_v29 }
 0x438   : > { %v1561_v28 = vpop.xlane.xlu1 %1560  ;;  %v1675_v38 = vpack.c.bf16 %v1648_v27, %v1647_v9  ;;  %3036 = vmatprep.subr.bf16.mxu0 %v3395_v29  ;;  %v1653_v22 = vmul.f32 %v3256_v26, %v3978_v12 }
 0x439   : > { %v3258_v19 = vpop.eup %3257  ;;  %3267 = vrcp.f32 %v1561_v28 }
 0x43a   : > { %v1654_v33 = vmul.f32 %v3258_v19, %v3983_v44  ;;  %3009 = vmatmul.mubr.msk.bf16.vlgmr.msra.gmra.mrb[48].mxu1 %vm1318_vm2, %v1675_v38  ;;  %v1564_v6 = vpop.xlane.xlu0 %1563 }
 0x43b   : > { %v3260_v8 = vpop.eup %3259  ;;  %3019 = vmatpush3.bf16.msra.mxu1 %v3905_v2  ;;  %3269 = vrcp.f32 %v1564_v6  ;;  %3020 = vmatprep.mubr.msk.bf16.mxu1 %vm3397_vm0, %v3395_v29 }
 0x43c   : > { %v1579_v59 = vpop.xlane.xlu1 %1578  ;;  %v1678_v34 = vpack.c.bf16 %v1654_v33, %v1653_v22  ;;  %3030 = vmatprep.subr.bf16.mxu1 %v3395_v29  ;;  %v1651_v12 = vmul.f32 %v3260_v8, %v3988_v14 }
 0x43d   : > { %v3262_v30 = vpop.eup %3261  ;;  %3271 = vrcp.f32 %v1579_v59 }
 0x43e   : > { %v1652_v44 = vmul.f32 %v3262_v30, %v3993_v35  ;;  %3027 = vmatmul.mubr.msk.bf16.vlgmr.msra.gmra.mrb[44].mxu0 %vm1318_vm2, %v1678_v34  ;;  %v1582_v11 = vpop.xlane.xlu0 %1581 }
 0x43f   : > { %v3264_v41 = vpop.eup %3263  ;;  %3037 = vmatpush3.bf16.msra.mxu0 %v3903_v1  ;;  %3273 = vrcp.f32 %v1582_v11  ;;  %3038 = vmatprep.mubr.msk.bf16.mxu0 %vm3397_vm0, %v3395_v29 }
 0x440   : > { %v1573_v2 = vpop.xlane.xlu1 %1572  ;;  %v1677_v57 = vpack.c.bf16 %v1652_v44, %v1651_v12  ;;  %3048 = vmatprep.subr.bf16.mxu0 %v3395_v29  ;;  %v1657_v14 = vmul.f32 %v3264_v41, %v3998_v48 }
 0x441   : > { %v3266_v50 = vpop.eup %3265  ;;  %3275 = vrcp.f32 %v1573_v2 }
 0x442   : > { %v1658_v35 = vmul.f32 %v3266_v50, %v4003_v56  ;;  %3021 = vmatmul.mubr.msk.bf16.vlgmr.msra.gmra.mrb[52].mxu1 %vm1318_vm2, %v1677_v57  ;;  %v1576_v20 = vpop.xlane.xlu0 %1575 }
 0x443   : > { %v3268_v13 = vpop.eup %3267  ;;  %3031 = vmatpush3.bf16.msra.mxu1 %v3895_v58  ;;  %3277 = vrcp.f32 %v1576_v20  ;;  %3032 = vmatprep.mubr.msk.bf16.mxu1 %vm3397_vm0, %v3395_v29 }
 0x444   : > { %v1591_v1 = vpop.xlane.xlu1 %1590  ;;  %v1680_v51 = vpack.c.bf16 %v1658_v35, %v1657_v14  ;;  %3042 = vmatprep.subr.bf16.mxu1 %v3395_v29  ;;  %v1655_v48 = vmul.f32 %v3268_v13, %v4008_v63 }
 0x445   : > { %v3270_v16 = vpop.eup %3269  ;;  %3279 = vrcp.f32 %v1591_v1 }
 0x446   : > { %v1656_v56 = vmul.f32 %v3270_v16, %v4013_v62  ;;  %3039 = vmatmul.mubr.msk.bf16.vlgmr.msra.gmra.mrb[48].mxu0 %vm1318_vm2, %v1680_v51  ;;  %v1594_v53 = vpop.xlane.xlu0 %1593 }
 0x447   : > { %v3272_v18 = vpop.eup %3271  ;;  %3049 = vmatpush3.bf16.msra.mxu0 %v3899_v0  ;;  %3281 = vrcp.f32 %v1594_v53  ;;  %3050 = vmatprep.mubr.msk.bf16.mxu0 %vm3397_vm0, %v3395_v29 }
 0x448   : > { %v1585_v58 = vpop.xlane.xlu1 %1584  ;;  %v1679_v23 = vpack.c.bf16 %v1656_v56, %v1655_v48  ;;  %3060 = vmatprep.subr.bf16.mxu0 %v3395_v29  ;;  %v1661_v63 = vmul.f32 %v3272_v18, %v4018_v3 }
 0x449   : > { %v3274_v40 = vpop.eup %3273  ;;  %3283 = vrcp.f32 %v1585_v58 }
 0x44a   : > { %v1662_v62 = vmul.f32 %v3274_v40, %v4023_v17  ;;  %3033 = vmatmul.mubr.msk.bf16.vlgmr.msra.gmra.mrb[56].mxu1 %vm1318_vm2, %v1679_v23  ;;  %v1588_v43 = vpop.xlane.xlu0 %1587 }
 0x44b   : > { %v3276_v54 = vpop.eup %3275  ;;  %3043 = vmatpush3.bf16.msra.mxu1 %v3909_v7  ;;  %3285 = vrcp.f32 %v1588_v43  ;;  %3044 = vmatprep.mubr.msk.bf16.mxu1 %vm3397_vm0, %v3395_v29 }
 0x44c   : > { %v1603_v0 = vpop.xlane.xlu1 %1602  ;;  %v1682_v55 = vpack.c.bf16 %v1662_v62, %v1661_v63  ;;  %3054 = vmatprep.subr.bf16.mxu1 %v3395_v29  ;;  %v1659_v3 = vmul.f32 %v3276_v54, %v4028_v25 }
 0x44d   : > { %v3278_v36 = vpop.eup %3277  ;;  %3287 = vrcp.f32 %v1603_v0 }
 0x44e   : > { %v1660_v17 = vmul.f32 %v3278_v36, %v4033_v24  ;;  %3051 = vmatmul.mubr.msk.bf16.vlgmr.msra.gmra.mrb[52].mxu0 %vm1318_vm2, %v1682_v55  ;;  %v1606_v49 = vpop.xlane.xlu0 %1605 }
 0x44f   : > { %v3280_v5 = vpop.eup %3279  ;;  %3061 = vmatpush3.bf16.msra.mxu0 %v4075_v4  ;;  %3289 = vrcp.f32 %v1606_v49  ;;  %3062 = vmatprep.mubr.msk.bf16.mxu0 %vm3397_vm0, %v3395_v29 }
 0x450   : > { %v1597_v7 = vpop.xlane.xlu1 %1596  ;;  %v1681_v46 = vpack.c.bf16 %v1660_v17, %v1659_v3  ;;  %3072 = vmatprep.subr.bf16.mxu0 %v3395_v29  ;;  %v1665_v25 = vmul.f32 %v3280_v5, %v4038_v32  ;;  %v3165_v3 = vld [vmem:[%s4307_s4] sm:$0xff]  }
 0x451   : > { %v3282_v15 = vpop.eup %3281  ;;  %3291 = vrcp.f32 %v1597_v7 }
 0x452   : > { %v1666_v24 = vmul.f32 %v3282_v15, %v4043_v10  ;;  %3045 = vmatmul.mubr.msk.bf16.vlgmr.msra.gmra.mrb[60].mxu1 %vm1318_vm2, %v1681_v46  ;;  %v1600_v52 = vpop.xlane.xlu0 %1599 }
 0x453   : > { %v3284_v31 = vpop.eup %3283  ;;  %3055 = vmatpush3.bf16.msra.mxu1 %v4077_v39  ;;  %3293 = vrcp.f32 %v1600_v52  ;;  %3056 = vmatprep.mubr.msk.bf16.mxu1 %vm3397_vm0, %v3395_v29 }
 0x454   : > { %v2393_v4 = vpop.permute.xlu1 %2392  ;;  %v1684_v9 = vpack.c.bf16 %v1666_v24, %v1665_v25  ;;  %3066 = vmatprep.subr.bf16.mxu1 %v3395_v29  ;;  %v1663_v45 = vmul.f32 %v3284_v31, %v4047_v21 }
 0x455   : > { %v3286_v27 = vpop.eup %3285 }
 0x456   : > { %v1664_v32 = vmul.f32 %v3286_v27, %v4051_v42  ;;  %3063 = vmatmul.mubr.msk.bf16.vlgmr.msra.gmra.mrb[56].mxu0 %vm1318_vm2, %v1684_v9  ;;  %v2346_v19 = vpop.permute.xlu0 %2345 }
 0x457   : > { %v3288_v10 = vpop.eup %3287  ;;  %3073 = vmatpush3.bf16.msra.mxu0 %v2393_v4  ;;  %3074 = vmatprep.mubr.msk.bf16.mxu0 %vm3397_vm0, %v3395_v29 }
 0x458   : > { %v1683_v39 = vpack.c.bf16 %v1664_v32, %v1663_v45  ;;  %v1669_v28 = vmul.f32 %v3288_v10, %v4055_v61  ;;  %v3166_v10 = vld [vmem:[%s4307_s4 + $0x8] sm:$0xff]  }
 0x459   : > { %v3290_v26 = vpop.eup %3289 }
 0x45a   : > { %v1670_v38 = vmul.f32 %v3290_v26, %v4059_v37  ;;  %3057 = vmatmul.mubr.msk.bf16.vlgmr.msra.gmra.mrb[64].mxu1 %vm1318_vm2, %v1683_v39 }
 0x45b   : > { %v3292_v22 = vpop.eup %3291  ;;  %3067 = vmatpush3.bf16.msra.mxu1 %v2346_v19  ;;  %3068 = vmatprep.mubr.msk.bf16.mxu1 %vm3397_vm0, %v3395_v29 }
 0x45c   : > { %v1686_v21 = vpack.c.bf16 %v1670_v38, %v1669_v28  ;;  %v1667_v33 = vmul.f32 %v3292_v22, %v4063_v60  ;;  %3078 = vmatprep.subr.bf16.mxu1 %v3165_v3 }
 0x45d   : > { %v3294_v42 = vpop.eup %3293 }
 0x45e   : > { %v1668_v6 = vmul.f32 %v3294_v42, %v4067_v47  ;;  %3075 = vmatmul.mubr.msk.bf16.vlgmr.msra.gmra.mrb[60].mxu0 %vm1318_vm2, %v1686_v21 }
 0x460   : > { %v1685_v8 = vpack.c.bf16 %v1668_v6, %v1667_v33 }
 0x462   : > { %3069 = vmatmul.mubr.msk.bf16.vlgmr.msra.gmra.mrb[68].mxu1 %vm1318_vm2, %v1685_v8 }
 0x463   : > { %3079 = vmatpush3.bf16.msra.mxu1 %v3165_v3 }
 0x464   : > { %3080 = vmatprep.subr.bf16.mxu1 %v3166_v10 }
 0x467   : > { %3081 = vmatpush3.bf16.msra.mxu1 %v3166_v10 }
 0x4cc   : > { %v4179_v61 = vpop.f32.mrb[40].mxu1 }
 0x4cd   : > { %v2986_v37 = vpop.f32.mrb[41].mxu1 }
 0x4ce   : > { %v4181_v59 = vpop.f32.mrb[42].mxu1 }
 0x4cf   : > { %v2439_v34 = vpack.c.bf16 %v4181_v59, %v4179_v61  ;;  %v2987_v29 = vpop.f32.mrb[43].mxu1 }
 0x4d0   : > { %v4185_v30 = vpop.f32.mrb[32].mxu0 }
 0x4d1   : > { %v2992_v12 = vpop.f32.mrb[33].mxu0 }
 0x4d2   : > { %v4187_v60 = vpop.f32.mrb[34].mxu0 }
 0x4d3   : > { %v2440_v47 = vpack.c.bf16 %v4187_v60, %v4185_v30  ;;  %v2993_v44 = vpop.f32.mrb[35].mxu0 }
 0x4d4   : > { %v4191_v11 = vpop.f32.mrb[44].mxu1 }
 0x4d5   : > { %v2998_v41 = vpop.f32.mrb[45].mxu1 }
 0x4d6   : > { %v4193_v2 = vpop.f32.mrb[46].mxu1 }
 0x4d7   : > { %v2441_v57 = vpack.c.bf16 %v4193_v2, %v4191_v11  ;;  %v2999_v50 = vpop.f32.mrb[47].mxu1  ;;  %v2767_v11 = vld [vmem:[%s4308_s5] ss:$0 sm:$0xff] }
 0x4d8   : > { %v4197_v14 = vpop.f32.mrb[36].mxu0 }
 0x4d9   : > { %v3004_v35 = vpop.f32.mrb[37].mxu0 }
 0x4da   : > { %v4199_v20 = vpop.f32.mrb[38].mxu0 }
 0x4db   : > { %v2442_v13 = vpack.c.bf16 %v4199_v20, %v4197_v14  ;;  %v3005_v1 = vpop.f32.mrb[39].mxu0 }
 0x509   : > { %v1962_v51 = vpop.f32.mrb[40].mxu0 }
 0x50a   : > { %v3016_v16 = vpop.f32.mrb[41].mxu0 }
 0x50b   : > { %v1965_v48 = vpop.f32.mrb[42].mxu0 }
 0x50c   : > { %v2444_v56 = vpack.c.bf16 %v1965_v48, %v1962_v51  ;;  %v3017_v53 = vpop.f32.mrb[43].mxu0 }
 0x50d   : > { %v1915_v18 = vpop.f32.mrb[48].mxu1 }
 0x50e   : > { %2461 = vrot.lane.b32.xlu1 %v2444_v56, %s3401_s29  ;;  %v3010_v58 = vpop.f32.mrb[49].mxu1 }
 0x50f   : > { %v1918_v23 = vpop.f32.mrb[50].mxu1 }
 0x510   : > { %v2443_v40 = vpack.c.bf16 %v1918_v23, %v1915_v18  ;;  %v3011_v63 = vpop.f32.mrb[51].mxu1 }
 0x511   : > { %v2056_v62 = vpop.f32.mrb[44].mxu0 }
 0x512   : > { %2459 = vrot.lane.b32.xlu0 %v2443_v40, %s3401_s29  ;;  %v3028_v43 = vpop.f32.mrb[45].mxu0 }
 0x513   : > { %v2059_v54 = vpop.f32.mrb[46].mxu0 }
 0x514   : > { %v2446_v0 = vpack.c.bf16 %v2059_v54, %v2056_v62  ;;  %v3029_v55 = vpop.f32.mrb[47].mxu0 }
 0x515   : > { %v2009_v36 = vpop.f32.mrb[52].mxu1 }
 0x516   : > { %2465 = vrot.lane.b32.xlu1 %v2446_v0, %s3401_s29  ;;  %v3022_v17 = vpop.f32.mrb[53].mxu1 }
 0x517   : > { %v2012_v49 = vpop.f32.mrb[54].mxu1 }
 0x518   : > { %v2445_v5 = vpack.c.bf16 %v2012_v49, %v2009_v36  ;;  %v3023_v7 = vpop.f32.mrb[55].mxu1 }
 0x519   : > { %v2150_v46 = vpop.f32.mrb[48].mxu0 }
 0x51a   : > { %2463 = vrot.lane.b32.xlu0 %v2445_v5, %s3401_s29  ;;  %v3040_v15 = vpop.f32.mrb[49].mxu0 }
 0x51b   : > { %v2153_v25 = vpop.f32.mrb[50].mxu0 }
 0x51c   : > { %v2448_v24 = vpack.c.bf16 %v2153_v25, %v2150_v46  ;;  %v3041_v52 = vpop.f32.mrb[51].mxu0 }
 0x51d   : > { %v2103_v31 = vpop.f32.mrb[56].mxu1 }
 0x51e   : > { %2473 = vrot.lane.b32.xlu1 %v2448_v24, %s3402_s14  ;;  %v3034_v4 = vpop.f32.mrb[57].mxu1 }
 0x51f   : > { %v2106_v9 = vpop.f32.mrb[58].mxu1 }
 0x520   : > { %v2447_v27 = vpack.c.bf16 %v2106_v9, %v2103_v31  ;;  %v3035_v45 = vpop.f32.mrb[59].mxu1 }
 0x521   : > { %v2244_v32 = vpop.f32.mrb[52].mxu0 }
 0x522   : > { %2471 = vrot.lane.b32.xlu0 %v2447_v27, %s3402_s14  ;;  %v3052_v39 = vpop.f32.mrb[53].mxu0 }
 0x523   : > { %v2247_v26 = vpop.f32.mrb[54].mxu0 }
 0x524   : > { %v2450_v28 = vpack.c.bf16 %v2247_v26, %v2244_v32  ;;  %v3053_v38 = vpop.f32.mrb[55].mxu0 }
 0x525   : > { %v2197_v19 = vpop.f32.mrb[60].mxu1 }
 0x526   : > { %v3046_v22 = vpop.f32.mrb[61].mxu1 }
 0x527   : > { %v2200_v21 = vpop.f32.mrb[62].mxu1 }
 0x528   : > { %v2449_v42 = vpack.c.bf16 %v2200_v21, %v2197_v19  ;;  %v3047_v33 = vpop.f32.mrb[63].mxu1 }
 0x529   : > { %v2338_v6 = vpop.f32.mrb[56].mxu0 }
 0x52a   : > { %v3064_v8 = vpop.f32.mrb[57].mxu0 }
 0x52b   : > { %v2341_v37 = vpop.f32.mrb[58].mxu0 }
 0x52c   : > { %v2452_v29 = vpack.c.bf16 %v2341_v37, %v2338_v6  ;;  %v3065_v12 = vpop.f32.mrb[59].mxu0 }
 0x52d   : > { %v2291_v44 = vpop.f32.mrb[64].mxu1 }
 0x52e   : > { %2485 = vrot.lane.b32.xlu1 %v2452_v29, %s3403_s16  ;;  %v3058_v41 = vpop.f32.mrb[65].mxu1 }
 0x52f   : > { %v2294_v50 = vpop.f32.mrb[66].mxu1 }
 0x530   : > { %v2451_v35 = vpack.c.bf16 %v2294_v50, %v2291_v44  ;;  %v3059_v1 = vpop.f32.mrb[67].mxu1 }
 0x531   : > { %v2432_v51 = vpop.f32.mrb[60].mxu0 }
 0x532   : > { %2477 = vrot.lane.b32.xlu1 %v2450_v28, %s3402_s14  ;;  %2483 = vrot.lane.b32.xlu0 %v2451_v35, %s3403_s16  ;;  %v3076_v16 = vpop.f32.mrb[61].mxu0 }
 0x533   : > { %v2435_v48 = vpop.f32.mrb[62].mxu0 }
 0x534   : > { %v2454_v56 = vpack.c.bf16 %v2435_v48, %v2432_v51  ;;  %v3077_v53 = vpop.f32.mrb[63].mxu0 }
 0x535   : > { %v2385_v18 = vpop.f32.mrb[68].mxu1 }
 0x536   : > { %2475 = vrot.lane.b32.xlu0 %v2449_v42, %s3402_s14  ;;  %2489 = vrot.lane.b32.xlu1 %v2454_v56, %s3403_s16  ;;  %v3070_v58 = vpop.f32.mrb[69].mxu1  ;;  %s3323_s14 = scalar_lea.vmem %s4252_s20, 1024 }
 0x537   : > { %v2388_v23 = vpop.f32.mrb[70].mxu1  ;;  %p3324_p6 = scmp.ne.s32.totalorder %s4252_s20, %s3323_s14 }
 0x538   : > { %v2453_v40 = vpack.c.bf16 %v2388_v23, %v2385_v18  ;;  %v3071_v63 = vpop.f32.mrb[71].mxu1 }
 0x539   : > { %p3325_p10 = pnand %p3324_p6, %p4320_p9 }
 0x53a   : > { %2487 = vrot.lane.b32.xlu0 %v2453_v40, %s3403_s16  ;;  %s3329_s16 = scalar_lea.vmem %s3328_s12, 2048 }
 0x53b   : > { %p3326_p12 = pneg %p3325_p10  ;;  %p3331_p3 = scmp.lt.s32.totalorder %s3329_s16, %s3323_s14 }
 0x53d   : > { %p3332_p4 = por %p3331_p3, %p3330_p2 }
 0x53f   : > { %p3333_p7 = pnand %p3332_p4, %p3326_p12 }
 0x580   : > { %v2462_v62 = vpop.permute.xlu1 %2461 }
 0x581   : > { %v2496_v49 = vsel %vm471_vm1, %v2440_v47, %v2462_v62 }
 0x584   : > { %v2460_v43 = vpop.permute.xlu0 %2459 }
 0x585   : > { %v2493_v17 = vsel %vm471_vm1, %v2439_v34, %v2460_v43 }
 0x588   : > { %v2466_v54 = vpop.permute.xlu1 %2465 }
 0x589   : > { %v2502_v60 = vsel %vm471_vm1, %v2442_v13, %v2466_v54 }
 0x58c   : > { %v2464_v0 = vpop.permute.xlu0 %2463 }
 0x58d   : > { %v2499_v34 = vsel %vm471_vm1, %v2441_v57, %v2464_v0 }
 0x590   : > { %v2474_v55 = vpop.permute.xlu1 %2473 }
 0x591   : > { %v2506_v46 = vsel %vm1318_vm2, %v2496_v49, %v2474_v55 }
 0x594   : > { %v2472_v36 = vpop.permute.xlu0 %2471 }
 0x595   : > { %v2504_v5 = vsel %vm1318_vm2, %v2493_v17, %v2472_v36 }
 0x5a0   : > { %v2486_v3 = vpop.permute.xlu1 %2485 }
 0x5a1   : > { %v2515_v61 = vsel %vm2511_vm3, %v2506_v46, %v2486_v3 }
 0x5a4   : > { %v2484_v7 = vpop.permute.xlu0 %2483  ;;  %v2478_v15 = vpop.permute.xlu1 %2477 }
 0x5a5   : > { %v2513_v25 = vsel %vm2511_vm3, %v2504_v5, %v2484_v7  ;;  %v2510_v52 = vsel %vm1318_vm2, %v2502_v60, %v2478_v15 }
 0x5a6   : > { %3082 = vmatprep.mubr.msk.bf16.mxu1 %vm2543_vm4, %v2513_v25 }
 0x5a7   : > { %3083 = vmatmul.mubr.msk.bf16.vlgmr.msra.gmra.mrb[72].mxu1 %vm2543_vm4, %v2515_v61 }
 0x5a8   : > { %v2476_v59 = vpop.permute.xlu0 %2475  ;;  %v2490_v30 = vpop.permute.xlu1 %2489 }
 0x5a9   : > { %v2508_v47 = vsel %vm1318_vm2, %v2499_v34, %v2476_v59  ;;  %v2519_v4 = vsel %vm2511_vm3, %v2510_v52, %v2490_v30 }
 0x5ac   : > { %v2488_v24 = vpop.permute.xlu0 %2487 }
 0x5ad   : > { %v2517_v31 = vsel %vm2511_vm3, %v2508_v47, %v2488_v24 }
 0x5ae   : > { %3086 = vmatprep.mubr.msk.bf16.mxu1 %vm2543_vm4, %v2517_v31 }
 0x5af   : > { %3087 = vmatmul.mubr.msk.bf16.gmra.mrb[76].mxu1 %vm2543_vm4, %v2519_v4 }
 0x67a   : > { %v3084_v2 = vpop.f32.mrb[72].mxu1 }
 0x67b   : > { %v2595_v57 = vadd.f32 %v3084_v2, %v2767_v11  ;;  %v2586_v14 = vpop.f32.mrb[73].mxu1 }
 0x67c   : > { %v2587_v20 = vadd.f32 %v2767_v11, %v2586_v14  ;;  %v3085_v13 = vpop.f32.mrb[74].mxu1 }
 0x67d   : > { %2619 = vst [vmem:[%s260_s19 + $0x10] sm:$0xff] %v2595_v57  ;;  %v2598_v9 = vadd.f32 %v3085_v13, %v2767_v11  ;;  %v2589_v27 = vpop.f32.mrb[75].mxu1 }
 0x67e   : > { %2617 = vst [vmem:[%s260_s19] sm:$0xff] %v2587_v20  ;;  %v2590_v45 = vadd.f32 %v2767_v11, %v2589_v27 }
 0x67f   : > { %2620 = vst [vmem:[%s260_s19 + $0x18] sm:$0xff] %v2598_v9 }
 0x680   : > { %2618 = vst [vmem:[%s260_s19 + $0x8] sm:$0xff] %v2590_v45 }
 0x682   : > { %v3088_v32 = vpop.f32.mrb[76].mxu1 }
 0x683   : > { %v2611_v10 = vadd.f32 %v3088_v32, %v2767_v11  ;;  %v2602_v39 = vpop.f32.mrb[77].mxu1 }
 0x684   : > { %v2603_v26 = vadd.f32 %v2767_v11, %v2602_v39  ;;  %v3089_v28 = vpop.f32.mrb[78].mxu1 }
 0x685   : > { %2623 = vst [vmem:[%s260_s19 + $0x30] sm:$0xff] %v2611_v10  ;;  %v2614_v38 = vadd.f32 %v3089_v28, %v2767_v11  ;;  %v2605_v19 = vpop.f32.mrb[79].mxu1 }
 0x686   : > { %2621 = vst [vmem:[%s260_s19 + $0x20] sm:$0xff] %v2603_v26  ;;  %v2606_v22 = vadd.f32 %v2767_v11, %v2605_v19 }
 0x687   : > { %2624 = vst [vmem:[%s260_s19 + $0x38] sm:$0xff] %v2614_v38 }
 0x688   : > { %2622 = vst [vmem:[%s260_s19 + $0x28] sm:$0xff] %v2606_v22 }
 0x689   : > { %3336 = shalt.err (!%p3333_p7)
}
 0x68a   : > { %s3337_s9 = scalar_lea.hbm %s4257_s13, 1024  ;;  %s3341_s18 = scalar_lea.hbm %s4309_s6, 2048 }
 0x68b   : > { %p3338_p8 = scmp.ne.s32.totalorder %s4257_s13, %s3337_s9  ;;  %p3342_p1 = scmp.lt.u32.totalorder %s4257_s13, %s4309_s6 }
 0x68c   : > { %p3343_p0 = scmp.lt.u32.totalorder %s3341_s18, %s3337_s9  ;;  %p3345_p6 = scmp.lt.u32.totalorder %s3337_s9, %s4257_s13 }
 0x68d   : > { %p3339_p11 = pnand %p3338_p8, %p4320_p9 }
 0x68e   : > { %p3344_p5 = por %p3343_p0, %p3342_p1 }
 0x68f   : > { %p3340_p13 = pneg %p3339_p11 }
 0x690   : > { %p3346_p10 = por %p3345_p6, %p3344_p5 }
 0x692   : > { %p3347_p12 = pnand %p3346_p10, %p3340_p13 }
 0x694   : > { %3350 = shalt.err (!%p3347_p12)
}
 0x695   : > { %s3405_s28 = smov 128  }
 0x696   : > { %3094 = dma.vmem_to_hbm [thread:$0]  (%p4320_p9), %s4252_s20, 1024, %s4257_s13, %s4261_s25, %s3405_s28, %s3405_s28, %s3401_s29  }
 0x697 PF: > { %p3106_p2 = scmp.ge.s32.totalorder %s3389_s24, 2  ;;  %s2654_s10 = sand.u32 1, %s3377_s21  }
 0x698   : > { %p4321_p3 = scmp.ne.s32.totalorder %s4314_s8, 0  ;;  %s2655_s14 = scalar_lea.sflag [#allocation4], %s2654_s10 }
 0x69a   : > { %p3101_p4 = pnand %p3106_p2, %p4321_p3 }
 0x69c   : > { %3372 = dma.done.wait (!%p3101_p4), %s2655_s14, 1024  }
 0x69d   : > { %3374 = vsyncadd (!%p3101_p4), %s2655_s14, 4294966272  ;;  %p17_p7 = scmp.ge.s32.totalorder %s3466_s27, 4   ;;  %s4322_s21 = smov %s3381_s22 }
 0x69e   : > { %s4323_s22 = smov %s3385_s23  ;;  %s4324_s23 = smov %s3477_s30 }
 0x69f   : > { %s4325_s24 = smov %s3466_s27  ;;  %19 = sbr.rel (!%p17_p7) target bundleno = 4 (0x4), region = 84 }
 0x6a6   :  { %2660 = vsyncpa [#allocation3], 1 }
 0x6a7   :  { %2662 = vsyncpa [#allocation3 + $0x1], 1 }
 0x6a8   :  { %2663 = vsyncpa [#allocation4], 1 }
 0x6a9   :  { %2665 = vsyncpa [#allocation4 + $0x1], 1 }

</bundles_post_ra>
